<compile_context>
chip_gen: v7x
topology: tpu7x:2x2x1
jax: 0.10.0
libtpu: 0.0.40
codegen_flags: <defaults>
</compile_context>

<pallas_src>
import functools

import numpy as np
import jax
import jax.numpy as jnp
from jax.experimental import pallas as pl
from jax.experimental.pallas import tpu as pltpu


# --------------------------------------------------------------------------
# Kernel
# --------------------------------------------------------------------------
def _lsa_kernel(x_ref, wqkv_ref, bqkv_ref, wout_ref, bout_ref,
                s_pool_ref, s_bcast_ref, o_ref, *, C, N):
    # x block: (1, C, TILE_L) in the caller's native dtype; cast to bf16 here
    # so no separate XLA cast pass reads/writes the full activation.
    x = x_ref[0].astype(jnp.bfloat16)                        # (C, TILE_L)
    tile_l = x.shape[1]
    p_tile = tile_l // N

    # ---- qkv_proj: 1x1 conv == channel matmul (bf16 MXU, f32 accumulate) ----
    qkv = jnp.dot(wqkv_ref[...], x,
                  preferred_element_type=jnp.float32)        # (O_pad, TILE_L)
    qkv = qkv + bqkv_ref[...]                                # (O_pad, 1) bias bcast

    # Rows were reordered host-side to [K, V, Q, pad]; all slices are
    # sublane-aligned (C % 8 == 0) -> free views, no relayout.
    key = qkv[0:C]                                           # (C, TILE_L)
    value = qkv[C:2 * C]                                     # (C, TILE_L)
    query = qkv[2 * C:2 * C + 1]                             # (1, TILE_L)

    # ---- softmax over the N patches inside each pixel segment (f32) ----
    # Only the single query row is reshaped (negligible relayout).  Keep the
    # per-segment max: a single global max could underflow the denominator.
    q_pn = query.reshape(p_tile, N)
    m = jnp.max(q_pn, axis=-1, keepdims=True)
    e = jnp.exp(q_pn - m)
    denom = jnp.sum(e, axis=-1, keepdims=True)
    scores = (e * pl.reciprocal(denom, approx=True)).reshape(1, tile_l)
    # TODO(synk): attn_dropout is identity for p=0.0 (inference); not implemented.

    # ---- context: per-segment sum over N, then broadcast back over N ----
    # Two skinny lane-dense MXU matmuls against 0/1 selectors (bf16 operands,
    # f32 accumulation).  Replaces the old O(L^2) block-diagonal selector.
    kv = (key * scores).astype(jnp.bfloat16)                 # (C, TILE_L)
    ctx_p = jnp.dot(kv, s_pool_ref[...],
                    preferred_element_type=jnp.float32)      # (C, P_tile)
    ctx = jnp.dot(ctx_p.astype(jnp.bfloat16), s_bcast_ref[...],
                  preferred_element_type=jnp.float32)        # (C, TILE_L)

    # ---- out = relu(value) * ctx ----
    out = jnp.maximum(value, 0.0) * ctx                      # (C, TILE_L) f32

    # ---- out_proj: 1x1 conv with bias (bf16 MXU, f32 accumulate) ----
    y = jnp.dot(wout_ref[...], out.astype(jnp.bfloat16),
                preferred_element_type=jnp.float32) + bout_ref[...]
    o_ref[0] = y.astype(o_ref.dtype)


# --------------------------------------------------------------------------
# One-time parameter packing (call once at model init, NOT per forward)
# --------------------------------------------------------------------------
def prepare_params(wqkv, bqkv, wout, bout):
    """Reorder fused qkv rows [Q,K,V] -> [K,V,Q], zero-pad to 8 rows, cast."""
    O, C = wqkv.shape
    assert O == 1 + 2 * C
    assert C % 8 == 0, "embed_dim must be a multiple of 8 for aligned K/V slices"
    O_pad = ((O + 7) // 8) * 8

    perm = np.concatenate([np.arange(1, 1 + C),          # K rows
                           np.arange(1 + C, 1 + 2 * C),  # V rows
                           np.array([0])])               # Q row
    wqkv_p = jnp.zeros((O_pad, C), jnp.bfloat16).at[:O].set(
        wqkv[perm].astype(jnp.bfloat16))
    bqkv_p = jnp.zeros((O_pad, 1), jnp.float32).at[:O, 0].set(
        bqkv[perm].astype(jnp.float32))
    wout_b = wout.astype(jnp.bfloat16)
    bout_p = bout.reshape(C, 1).astype(jnp.float32)
    return wqkv_p, bqkv_p, wout_b, bout_p


# --------------------------------------------------------------------------
# Tiling / VMEM heuristics
# --------------------------------------------------------------------------
def _choose_tile_l(L, N, target_lanes=2048):
    """Largest TILE_L that is a multiple of N, divides L, is lane-dense
    (multiple of 128, or the full extent) and stays <= target_lanes."""
    P = L // N
    best = None
    for k in range(1, P + 1):
        if P % k:
            continue
        t = k * N
        if t % 128 != 0 and t != L:
            continue
        if t <= target_lanes:
            best = t
    if best is None:
        for k in range(1, P + 1):
            t = k * N
            if P % k == 0 and (t % 128 == 0 or t == L):
                best = t
                break
    return best if best is not None else L


def _vmem_estimate(C, O_pad, tile_l, p_tile, x_bytes, out_bytes):
    io_blocks = 2 * C * tile_l * (x_bytes + out_bytes)            # pipelined x/out
    invariants = 2 * ((O_pad * C + C * C) * 2 + (O_pad + C) * 4
                      + 2 * tile_l * p_tile * 2)                  # weights/bias/selectors
    intermediates = (O_pad + 4 * C) * tile_l * 4                  # qkv/ctx/out f32 live values
    return io_blocks + invariants + intermediates


# --------------------------------------------------------------------------
# Jitted forward
# --------------------------------------------------------------------------
@functools.partial(jax.jit,
                   static_argnames=("tile_l", "out_dtype", "single_buffer"))
def _lsa_forward(x, wqkv_p, bqkv_p, wout_b, bout_p, *,
                 tile_l, out_dtype, single_buffer):
    B, C, P, N = x.shape
    L = P * N
    assert L % tile_l == 0 and tile_l % N == 0
    p_tile = tile_l // N
    O_pad = wqkv_p.shape[0]
    out_dtype = x.dtype if out_dtype is None else out_dtype

    x_flat = x.reshape(B, C, L)          # contiguous reshape: free

    # Skinny pooling / broadcast selectors as numpy compile-time constants
    # (no per-call materialization cost).  bf16 is exact for 0/1 entries.
    seg = np.arange(tile_l) // N
    s_pool_np = (seg[:, None] == np.arange(p_tile)[None, :]).astype(np.float32)
    s_pool = jnp.asarray(s_pool_np, dtype=jnp.bfloat16)          # (TILE_L, P_tile)
    s_bcast = jnp.asarray(s_pool_np.T, dtype=jnp.bfloat16)       # (P_tile, TILE_L)

    def inv_spec(shape):
        # Grid-invariant operand: constant index_map; single-buffer if allowed.
        idx = lambda b, j: (0,) * len(shape)
        if single_buffer:
            return pl.BlockSpec(shape, idx, pipeline_mode=pl.Buffered(1))
        return pl.BlockSpec(shape, idx)

    grid_spec = pltpu.PrefetchScalarGridSpec(
        num_scalar_prefetch=0,
        grid=(B, L // tile_l),
        in_specs=[
            pl.BlockSpec((1, C, tile_l), lambda b, j: (b, 0, j)),
            inv_spec((O_pad, C)),
            inv_spec((O_pad, 1)),
            inv_spec((C, C)),
            inv_spec((C, 1)),
            inv_spec((tile_l, p_tile)),
            inv_spec((p_tile, tile_l)),
        ],
        out_specs=pl.BlockSpec((1, C, tile_l), lambda b, j: (b, 0, j)),
    )

    est = _vmem_estimate(C, O_pad, tile_l, p_tile,
                         x.dtype.itemsize, jnp.dtype(out_dtype).itemsize)
    # Clamp to 64 MiB so a v6e-sized plan never over-asks on v7x; raise the cap
    # toward 96 MiB on v5e/v6e if using very large tiles.
    vmem_limit = int(min(max(2 * est, 32 * 1024 * 1024), 64 * 1024 * 1024))

    y = pl.pallas_call(
        functools.partial(_lsa_kernel, C=C, N=N),
        out_shape=jax.ShapeDtypeStruct((B, C, L), out_dtype),
        grid_spec=grid_spec,
        compiler_params=pltpu.CompilerParams(
            dimension_semantics=("parallel", "parallel"),
            vmem_limit_bytes=vmem_limit),
    )(x_flat, wqkv_p, bqkv_p, wout_b, bout_p, s_pool, s_bcast)
    return y.reshape(B, C, P, N)


# --------------------------------------------------------------------------
# Public wrapper (handles tile choice + Buffered(1) capability fallback)
# --------------------------------------------------------------------------
_SINGLE_BUFFER_OK = None   # resolved on first call


def linear_self_attention(x, packed_params, *, tile_l=None, out_dtype=None):
    """x: (B, C, P, N); packed_params from prepare_params(). Returns (B,C,P,N)."""
    global _SINGLE_BUFFER_OK
    B, C, P, N = x.shape
    L = P * N
    if tile_l is None:
        tile_l = _choose_tile_l(L, N)
    assert L % tile_l == 0 and tile_l % N == 0, \
        "TILE_L must divide L and be a multiple of N (softmax segment size)"

    if _SINGLE_BUFFER_OK is None:
        if hasattr(pl, "Buffered"):
            try:
                y = _lsa_forward(x, *packed_params, tile_l=tile_l,
                                 out_dtype=out_dtype, single_buffer=True)
                jax.block_until_ready(y)
                _SINGLE_BUFFER_OK = True
                return y
            except Exception:
                _SINGLE_BUFFER_OK = False
        else:
            _SINGLE_BUFFER_OK = False
    return _lsa_forward(x, *packed_params, tile_l=tile_l,
                        out_dtype=out_dtype, single_buffer=_SINGLE_BUFFER_OK)


# --------------------------------------------------------------------------
# Pure-JAX reference (matches the PyTorch module, f32)
# --------------------------------------------------------------------------
def reference(x, wqkv, bqkv, wout, bout):
    B, C, P, N = x.shape
    qkv = jnp.einsum('oc,bcpn->bopn', wqkv, x) + bqkv[None, :, None, None]
    q = qkv[:, :1]
    k = qkv[:, 1:1 + C]
    v = qkv[:, 1 + C:]
    scores = jax.nn.softmax(q, axis=-1)
    ctx = jnp.sum(k * scores, axis=-1, keepdims=True)
    out = jax.nn.relu(v) * ctx
    return jnp.einsum('oc,bcpn->bopn', wout, out) + bout[None, :, None, None]


if __name__ == "__main__":
    B, C, P, N = 2, 32, 4, 128          # batch, embed_dim, pixels/patch, patches
    O = 1 + 2 * C

    key = jax.random.PRNGKey(0)
    k1, k2, k3, k4, k5 = jax.random.split(key, 5)
    x = jax.random.normal(k1, (B, C, P, N), dtype=jnp.float32)
    wqkv = jax.random.normal(k2, (O, C), dtype=jnp.float32) * 0.1
    bqkv = jax.random.normal(k3, (O,), dtype=jnp.float32) * 0.1
    wout = jax.random.normal(k4, (C, C), dtype=jnp.float32) * 0.1
    bout = jax.random.normal(k5, (C,), dtype=jnp.float32) * 0.1

    params = prepare_params(wqkv, bqkv, wout, bout)   # one-time repack/cast
    y_ref = reference(x, wqkv, bqkv, wout, bout)

    # Auto-chosen tile (full L at this small shape).
    y = jax.block_until_ready(linear_self_attention(x, params))
    # Tolerance loosened for bf16 MXU operands + approx reciprocal (inference).
    assert jnp.allclose(y, y_ref, atol=2e-2, rtol=2e-2), "mismatch (auto tile)"

    # Explicit smaller tile to exercise the L-tiled grid path (grid = (B, 4)).
    y_t = jax.block_until_ready(linear_self_attention(x, params, tile_l=128))
    assert jnp.allclose(y_t, y_ref, atol=2e-2, rtol=2e-2), "mismatch (tile_l=128)"

    print("KERNEL_OK")
</pallas_src>

<mosaic_0001>
module attributes {stable_mosaic.version = 11 : i64} {
  func.func @_lsa_kernel(%arg0: i32, %arg1: i32, %arg2: memref<1x32x512xf32, #tpu.memory_space<vmem>>, %arg3: memref<72x32xbf16, #tpu.memory_space<vmem>>, %arg4: memref<72x1xf32, #tpu.memory_space<vmem>>, %arg5: memref<32x32xbf16, #tpu.memory_space<vmem>>, %arg6: memref<32x1xf32, #tpu.memory_space<vmem>>, %arg7: memref<512x4xbf16, #tpu.memory_space<vmem>>, %arg8: memref<4x512xbf16, #tpu.memory_space<vmem>>, %arg9: memref<1x32x512xf32, #tpu.memory_space<vmem>>) attributes {dimension_semantics = [#tpu.dimension_semantics<parallel>, #tpu.dimension_semantics<parallel>], iteration_bounds = array<i64: 2, 1>, scalar_prefetch = 0 : i64, scratch_operands = 0 : i64, tpu.core_type = #tpu.core_type<tc>, window_params = [{transform_indices = @transform_0, window_bounds = array<i64: 1, 32, 512>}, {pipeline_mode = #tpu.pipeline_mode<synchronous>, transform_indices = @transform_1, window_bounds = array<i64: 72, 32>}, {pipeline_mode = #tpu.pipeline_mode<synchronous>, transform_indices = @transform_2, window_bounds = array<i64: 72, 1>}, {pipeline_mode = #tpu.pipeline_mode<synchronous>, transform_indices = @transform_3, window_bounds = array<i64: 32, 32>}, {pipeline_mode = #tpu.pipeline_mode<synchronous>, transform_indices = @transform_4, window_bounds = array<i64: 32, 1>}, {pipeline_mode = #tpu.pipeline_mode<synchronous>, transform_indices = @transform_5, window_bounds = array<i64: 512, 4>}, {pipeline_mode = #tpu.pipeline_mode<synchronous>, transform_indices = @transform_6, window_bounds = array<i64: 4, 512>}, {transform_indices = @transform_7, window_bounds = array<i64: 1, 32, 512>}]} {
    %c0 = arith.constant 0 : index
    %c0_0 = arith.constant 0 : index
    %c0_1 = arith.constant 0 : index
    %0 = vector.load %arg2[%c0, %c0_0, %c0_1] : memref<1x32x512xf32, #tpu.memory_space<vmem>>, vector<1x32x512xf32>
    %1 = vector.shape_cast %0 : vector<1x32x512xf32> to vector<32x512xf32>
    %2 = arith.truncf %1 : vector<32x512xf32> to vector<32x512xbf16>
    %c0_2 = arith.constant 0 : index
    %c0_3 = arith.constant 0 : index
    %3 = vector.load %arg3[%c0_2, %c0_3] : memref<72x32xbf16, #tpu.memory_space<vmem>>, vector<72x32xbf16>
    %cst = arith.constant dense<0.000000e+00> : vector<72x512xf32>
    %4 = tpu.matmul %3, %2, %cst {dimension_numbers = #tpu.dot_dimension_numbers<[1], [0], [0], [1], [0, 0, 1, 1], [], []>} : vector<72x32xbf16>, vector<32x512xbf16>, vector<72x512xf32> -> vector<72x512xf32>
    %c0_4 = arith.constant 0 : index
    %c0_5 = arith.constant 0 : index
    %5 = vector.load %arg4[%c0_4, %c0_5] : memref<72x1xf32, #tpu.memory_space<vmem>>, vector<72x1xf32>
    %6 = vector.broadcast %5 : vector<72x1xf32> to vector<72x512xf32>
    %7 = arith.addf %4, %6 : vector<72x512xf32>
    %8 = vector.extract_strided_slice %7 {offsets = [0, 0], sizes = [32, 512], strides = [1, 1]} : vector<72x512xf32> to vector<32x512xf32>
    %9 = vector.extract_strided_slice %7 {offsets = [32, 0], sizes = [32, 512], strides = [1, 1]} : vector<72x512xf32> to vector<32x512xf32>
    %10 = vector.extract_strided_slice %7 {offsets = [64, 0], sizes = [1, 512], strides = [1, 1]} : vector<72x512xf32> to vector<1x512xf32>
    %11 = vector.shape_cast %10 : vector<1x512xf32> to vector<4x128xf32>
    %cst_6 = arith.constant dense<0xFF800000> : vector<4xf32>
    %12 = vector.multi_reduction <maximumf>, %11, %cst_6 [1] : vector<4x128xf32> to vector<4xf32>
    %13 = vector.shape_cast %12 : vector<4xf32> to vector<4x1xf32>
    %14 = vector.broadcast %13 : vector<4x1xf32> to vector<4x128xf32>
    %15 = arith.subf %11, %14 : vector<4x128xf32>
    %16 = math.exp %15 : vector<4x128xf32>
    %cst_7 = arith.constant dense<0.000000e+00> : vector<4xf32>
    %17 = vector.multi_reduction <add>, %16, %cst_7 [1] : vector<4x128xf32> to vector<4xf32>
    %18 = vector.shape_cast %17 : vector<4xf32> to vector<4x1xf32>
    %19 = tpu.reciprocal %18 {approx = true} : vector<4x1xf32> -> vector<4x1xf32>
    %20 = vector.broadcast %19 : vector<4x1xf32> to vector<4x128xf32>
    %21 = arith.mulf %16, %20 : vector<4x128xf32>
    %22 = vector.shape_cast %21 : vector<4x128xf32> to vector<1x512xf32>
    %23 = vector.broadcast %22 : vector<1x512xf32> to vector<32x512xf32>
    %24 = arith.mulf %8, %23 : vector<32x512xf32>
    %25 = arith.truncf %24 : vector<32x512xf32> to vector<32x512xbf16>
    %c0_8 = arith.constant 0 : index
    %c0_9 = arith.constant 0 : index
    %26 = vector.load %arg7[%c0_8, %c0_9] : memref<512x4xbf16, #tpu.memory_space<vmem>>, vector<512x4xbf16>
    %cst_10 = arith.constant dense<0.000000e+00> : vector<32x4xf32>
    %27 = tpu.matmul %25, %26, %cst_10 {dimension_numbers = #tpu.dot_dimension_numbers<[1], [0], [0], [1], [0, 0, 1, 1], [], []>} : vector<32x512xbf16>, vector<512x4xbf16>, vector<32x4xf32> -> vector<32x4xf32>
    %28 = arith.truncf %27 : vector<32x4xf32> to vector<32x4xbf16>
    %c0_11 = arith.constant 0 : index
    %c0_12 = arith.constant 0 : index
    %29 = vector.load %arg8[%c0_11, %c0_12] : memref<4x512xbf16, #tpu.memory_space<vmem>>, vector<4x512xbf16>
    %cst_13 = arith.constant dense<0.000000e+00> : vector<32x512xf32>
    %30 = tpu.matmul %28, %29, %cst_13 {dimension_numbers = #tpu.dot_dimension_numbers<[1], [0], [0], [1], [0, 0, 1, 1], [], []>} : vector<32x4xbf16>, vector<4x512xbf16>, vector<32x512xf32> -> vector<32x512xf32>
    %cst_14 = arith.constant 0.000000e+00 : f32
    %31 = vector.broadcast %cst_14 : f32 to vector<32x512xf32>
    %32 = arith.maximumf %9, %31 : vector<32x512xf32>
    %33 = arith.mulf %32, %30 : vector<32x512xf32>
    %c0_15 = arith.constant 0 : index
    %c0_16 = arith.constant 0 : index
    %34 = vector.load %arg5[%c0_15, %c0_16] : memref<32x32xbf16, #tpu.memory_space<vmem>>, vector<32x32xbf16>
    %35 = arith.truncf %33 : vector<32x512xf32> to vector<32x512xbf16>
    %cst_17 = arith.constant dense<0.000000e+00> : vector<32x512xf32>
    %36 = tpu.matmul %34, %35, %cst_17 {dimension_numbers = #tpu.dot_dimension_numbers<[1], [0], [0], [1], [0, 0, 1, 1], [], []>} : vector<32x32xbf16>, vector<32x512xbf16>, vector<32x512xf32> -> vector<32x512xf32>
    %c0_18 = arith.constant 0 : index
    %c0_19 = arith.constant 0 : index
    %37 = vector.load %arg6[%c0_18, %c0_19] : memref<32x1xf32, #tpu.memory_space<vmem>>, vector<32x1xf32>
    %38 = vector.broadcast %37 : vector<32x1xf32> to vector<32x512xf32>
    %39 = arith.addf %36, %38 : vector<32x512xf32>
    %c0_20 = arith.constant 0 : index
    %c0_21 = arith.constant 0 : index
    %c0_22 = arith.constant 0 : index
    %40 = vector.load %arg9[%c0_20, %c0_21, %c0_22] : memref<1x32x512xf32, #tpu.memory_space<vmem>>, vector<1x32x512xf32>
    %41 = vector.shape_cast %40 : vector<1x32x512xf32> to vector<32x512xf32>
    %42 = vector.shape_cast %39 : vector<32x512xf32> to vector<1x32x512xf32>
    tpu.vector_store %arg9[%c0_20, %c0_21, %c0_22], %42 {strides = array<i32>} : memref<1x32x512xf32, #tpu.memory_space<vmem>>, vector<1x32x512xf32>,
    return
  }
  func.func @transform_0(%arg0: i32, %arg1: i32) -> (i32, i32, i32) {
    %c0_i32 = arith.constant 0 : i32
    %c0_i32_0 = arith.constant 0 : i32
    return %arg0, %c0_i32, %arg1 : i32, i32, i32
  }
  func.func @transform_1(%arg0: i32, %arg1: i32) -> (i32, i32) {
    %c0_i32 = arith.constant 0 : i32
    %c0_i32_0 = arith.constant 0 : i32
    %c0_i32_1 = arith.constant 0 : i32
    return %c0_i32, %c0_i32_0 : i32, i32
  }
  func.func @transform_2(%arg0: i32, %arg1: i32) -> (i32, i32) {
    %c0_i32 = arith.constant 0 : i32
    %c0_i32_0 = arith.constant 0 : i32
    %c0_i32_1 = arith.constant 0 : i32
    return %c0_i32, %c0_i32_0 : i32, i32
  }
  func.func @transform_3(%arg0: i32, %arg1: i32) -> (i32, i32) {
    %c0_i32 = arith.constant 0 : i32
    %c0_i32_0 = arith.constant 0 : i32
    %c0_i32_1 = arith.constant 0 : i32
    return %c0_i32, %c0_i32_0 : i32, i32
  }
  func.func @transform_4(%arg0: i32, %arg1: i32) -> (i32, i32) {
    %c0_i32 = arith.constant 0 : i32
    %c0_i32_0 = arith.constant 0 : i32
    %c0_i32_1 = arith.constant 0 : i32
    return %c0_i32, %c0_i32_0 : i32, i32
  }
  func.func @transform_5(%arg0: i32, %arg1: i32) -> (i32, i32) {
    %c0_i32 = arith.constant 0 : i32
    %c0_i32_0 = arith.constant 0 : i32
    %c0_i32_1 = arith.constant 0 : i32
    return %c0_i32, %c0_i32_0 : i32, i32
  }
  func.func @transform_6(%arg0: i32, %arg1: i32) -> (i32, i32) {
    %c0_i32 = arith.constant 0 : i32
    %c0_i32_0 = arith.constant 0 : i32
    %c0_i32_1 = arith.constant 0 : i32
    return %c0_i32, %c0_i32_0 : i32, i32
  }
  func.func @transform_7(%arg0: i32, %arg1: i32) -> (i32, i32, i32) {
    %c0_i32 = arith.constant 0 : i32
    %c0_i32_0 = arith.constant 0 : i32
    return %arg0, %c0_i32, %arg1 : i32, i32, i32
  }
}

module attributes {stable_mosaic.version = 11 : i64} {
  func.func @_lsa_kernel(%arg0: i32, %arg1: i32, %arg2: memref<1x32x512xf32, #tpu.memory_space<vmem>>, %arg3: memref<72x32xbf16, #tpu.memory_space<vmem>>, %arg4: memref<72x1xf32, #tpu.memory_space<vmem>>, %arg5: memref<32x32xbf16, #tpu.memory_space<vmem>>, %arg6: memref<32x1xf32, #tpu.memory_space<vmem>>, %arg7: memref<512x4xbf16, #tpu.memory_space<vmem>>, %arg8: memref<4x512xbf16, #tpu.memory_space<vmem>>, %arg9: memref<1x32x512xf32, #tpu.memory_space<vmem>>) attributes {dimension_semantics = [#tpu.dimension_semantics<parallel>, #tpu.dimension_semantics<parallel>], iteration_bounds = array<i64: 2, 1>, scalar_prefetch = 0 : i64, scratch_operands = 0 : i64, tpu.core_type = #tpu.core_type<tc>, window_params = [{transform_indices = @transform_0, window_bounds = array<i64: 1, 32, 512>}, {pipeline_mode = #tpu.pipeline_mode<synchronous>, transform_indices = @transform_1, window_bounds = array<i64: 72, 32>}, {pipeline_mode = #tpu.pipeline_mode<synchronous>, transform_indices = @transform_2, window_bounds = array<i64: 72, 1>}, {pipeline_mode = #tpu.pipeline_mode<synchronous>, transform_indices = @transform_3, window_bounds = array<i64: 32, 32>}, {pipeline_mode = #tpu.pipeline_mode<synchronous>, transform_indices = @transform_4, window_bounds = array<i64: 32, 1>}, {pipeline_mode = #tpu.pipeline_mode<synchronous>, transform_indices = @transform_5, window_bounds = array<i64: 512, 4>}, {pipeline_mode = #tpu.pipeline_mode<synchronous>, transform_indices = @transform_6, window_bounds = array<i64: 4, 512>}, {transform_indices = @transform_7, window_bounds = array<i64: 1, 32, 512>}]} {
    %c0 = arith.constant 0 : index
    %c0_0 = arith.constant 0 : index
    %c0_1 = arith.constant 0 : index
    %0 = vector.load %arg2[%c0, %c0_0, %c0_1] : memref<1x32x512xf32, #tpu.memory_space<vmem>>, vector<1x32x512xf32>
    %1 = vector.shape_cast %0 : vector<1x32x512xf32> to vector<32x512xf32>
    %2 = arith.truncf %1 : vector<32x512xf32> to vector<32x512xbf16>
    %c0_2 = arith.constant 0 : index
    %c0_3 = arith.constant 0 : index
    %3 = vector.load %arg3[%c0_2, %c0_3] : memref<72x32xbf16, #tpu.memory_space<vmem>>, vector<72x32xbf16>
    %cst = arith.constant dense<0.000000e+00> : vector<72x512xf32>
    %4 = tpu.matmul %3, %2, %cst {dimension_numbers = #tpu.dot_dimension_numbers<[1], [0], [0], [1], [0, 0, 1, 1], [], []>} : vector<72x32xbf16>, vector<32x512xbf16>, vector<72x512xf32> -> vector<72x512xf32>
    %c0_4 = arith.constant 0 : index
    %c0_5 = arith.constant 0 : index
    %5 = vector.load %arg4[%c0_4, %c0_5] : memref<72x1xf32, #tpu.memory_space<vmem>>, vector<72x1xf32>
    %6 = vector.broadcast %5 : vector<72x1xf32> to vector<72x512xf32>
    %7 = arith.addf %4, %6 : vector<72x512xf32>
    %8 = vector.extract_strided_slice %7 {offsets = [0, 0], sizes = [32, 512], strides = [1, 1]} : vector<72x512xf32> to vector<32x512xf32>
    %9 = vector.extract_strided_slice %7 {offsets = [32, 0], sizes = [32, 512], strides = [1, 1]} : vector<72x512xf32> to vector<32x512xf32>
    %10 = vector.extract_strided_slice %7 {offsets = [64, 0], sizes = [1, 512], strides = [1, 1]} : vector<72x512xf32> to vector<1x512xf32>
    %11 = vector.shape_cast %10 : vector<1x512xf32> to vector<4x128xf32>
    %cst_6 = arith.constant dense<0xFF800000> : vector<4xf32>
    %12 = vector.multi_reduction <maximumf>, %11, %cst_6 [1] : vector<4x128xf32> to vector<4xf32>
    %13 = vector.shape_cast %12 : vector<4xf32> to vector<4x1xf32>
    %14 = vector.broadcast %13 : vector<4x1xf32> to vector<4x128xf32>
    %15 = arith.subf %11, %14 : vector<4x128xf32>
    %16 = math.exp %15 : vector<4x128xf32>
    %cst_7 = arith.constant dense<0.000000e+00> : vector<4xf32>
    %17 = vector.multi_reduction <add>, %16, %cst_7 [1] : vector<4x128xf32> to vector<4xf32>
    %18 = vector.shape_cast %17 : vector<4xf32> to vector<4x1xf32>
    %19 = tpu.reciprocal %18 {approx = true} : vector<4x1xf32> -> vector<4x1xf32>
    %20 = vector.broadcast %19 : vector<4x1xf32> to vector<4x128xf32>
    %21 = arith.mulf %16, %20 : vector<4x128xf32>
    %22 = vector.shape_cast %21 : vector<4x128xf32> to vector<1x512xf32>
    %23 = vector.broadcast %22 : vector<1x512xf32> to vector<32x512xf32>
    %24 = arith.mulf %8, %23 : vector<32x512xf32>
    %25 = arith.truncf %24 : vector<32x512xf32> to vector<32x512xbf16>
    %c0_8 = arith.constant 0 : index
    %c0_9 = arith.constant 0 : index
    %26 = vector.load %arg7[%c0_8, %c0_9] : memref<512x4xbf16, #tpu.memory_space<vmem>>, vector<512x4xbf16>
    %cst_10 = arith.constant dense<0.000000e+00> : vector<32x4xf32>
    %27 = tpu.matmul %25, %26, %cst_10 {dimension_numbers = #tpu.dot_dimension_numbers<[1], [0], [0], [1], [0, 0, 1, 1], [], []>} : vector<32x512xbf16>, vector<512x4xbf16>, vector<32x4xf32> -> vector<32x4xf32>
    %28 = arith.truncf %27 : vector<32x4xf32> to vector<32x4xbf16>
    %c0_11 = arith.constant 0 : index
    %c0_12 = arith.constant 0 : index
    %29 = vector.load %arg8[%c0_11, %c0_12] : memref<4x512xbf16, #tpu.memory_space<vmem>>, vector<4x512xbf16>
    %cst_13 = arith.constant dense<0.000000e+00> : vector<32x512xf32>
    %30 = tpu.matmul %28, %29, %cst_13 {dimension_numbers = #tpu.dot_dimension_numbers<[1], [0], [0], [1], [0, 0, 1, 1], [], []>} : vector<32x4xbf16>, vector<4x512xbf16>, vector<32x512xf32> -> vector<32x512xf32>
    %cst_14 = arith.constant 0.000000e+00 : f32
    %31 = vector.broadcast %cst_14 : f32 to vector<32x512xf32>
    %32 = arith.maximumf %9, %31 : vector<32x512xf32>
    %33 = arith.mulf %32, %30 : vector<32x512xf32>
    %c0_15 = arith.constant 0 : index
    %c0_16 = arith.constant 0 : index
    %34 = vector.load %arg5[%c0_15, %c0_16] : memref<32x32xbf16, #tpu.memory_space<vmem>>, vector<32x32xbf16>
    %35 = arith.truncf %33 : vector<32x512xf32> to vector<32x512xbf16>
    %cst_17 = arith.constant dense<0.000000e+00> : vector<32x512xf32>
    %36 = tpu.matmul %34, %35, %cst_17 {dimension_numbers = #tpu.dot_dimension_numbers<[1], [0], [0], [1], [0, 0, 1, 1], [], []>} : vector<32x32xbf16>, vector<32x512xbf16>, vector<32x512xf32> -> vector<32x512xf32>
    %c0_18 = arith.constant 0 : index
    %c0_19 = arith.constant 0 : index
    %37 = vector.load %arg6[%c0_18, %c0_19] : memref<32x1xf32, #tpu.memory_space<vmem>>, vector<32x1xf32>
    %38 = vector.broadcast %37 : vector<32x1xf32> to vector<32x512xf32>
    %39 = arith.addf %36, %38 : vector<32x512xf32>
    %c0_20 = arith.constant 0 : index
    %c0_21 = arith.constant 0 : index
    %c0_22 = arith.constant 0 : index
    %40 = vector.load %arg9[%c0_20, %c0_21, %c0_22] : memref<1x32x512xf32, #tpu.memory_space<vmem>>, vector<1x32x512xf32>
    %41 = vector.shape_cast %40 : vector<1x32x512xf32> to vector<32x512xf32>
    %42 = vector.shape_cast %39 : vector<32x512xf32> to vector<1x32x512xf32>
    tpu.vector_store %arg9[%c0_20, %c0_21, %c0_22], %42 {strides = array<i32>} : memref<1x32x512xf32, #tpu.memory_space<vmem>>, vector<1x32x512xf32>,
    return
  }
  func.func @transform_0(%arg0: i32, %arg1: i32) -> (i32, i32, i32) {
    %c0_i32 = arith.constant 0 : i32
    %c0_i32_0 = arith.constant 0 : i32
    return %arg0, %c0_i32, %arg1 : i32, i32, i32
  }
  func.func @transform_1(%arg0: i32, %arg1: i32) -> (i32, i32) {
    %c0_i32 = arith.constant 0 : i32
    %c0_i32_0 = arith.constant 0 : i32
    %c0_i32_1 = arith.constant 0 : i32
    return %c0_i32, %c0_i32_0 : i32, i32
  }
  func.func @transform_2(%arg0: i32, %arg1: i32) -> (i32, i32) {
    %c0_i32 = arith.constant 0 : i32
    %c0_i32_0 = arith.constant 0 : i32
    %c0_i32_1 = arith.constant 0 : i32
    return %c0_i32, %c0_i32_0 : i32, i32
  }
  func.func @transform_3(%arg0: i32, %arg1: i32) -> (i32, i32) {
    %c0_i32 = arith.constant 0 : i32
    %c0_i32_0 = arith.constant 0 : i32
    %c0_i32_1 = arith.constant 0 : i32
    return %c0_i32, %c0_i32_0 : i32, i32
  }
  func.func @transform_4(%arg0: i32, %arg1: i32) -> (i32, i32) {
    %c0_i32 = arith.constant 0 : i32
    %c0_i32_0 = arith.constant 0 : i32
    %c0_i32_1 = arith.constant 0 : i32
    return %c0_i32, %c0_i32_0 : i32, i32
  }
  func.func @transform_5(%arg0: i32, %arg1: i32) -> (i32, i32) {
    %c0_i32 = arith.constant 0 : i32
    %c0_i32_0 = arith.constant 0 : i32
    %c0_i32_1 = arith.constant 0 : i32
    return %c0_i32, %c0_i32_0 : i32, i32
  }
  func.func @transform_6(%arg0: i32, %arg1: i32) -> (i32, i32) {
    %c0_i32 = arith.constant 0 : i32
    %c0_i32_0 = arith.constant 0 : i32
    %c0_i32_1 = arith.constant 0 : i32
    return %c0_i32, %c0_i32_0 : i32, i32
  }
  func.func @transform_7(%arg0: i32, %arg1: i32) -> (i32, i32, i32) {
    %c0_i32 = arith.constant 0 : i32
    %c0_i32_0 = arith.constant 0 : i32
    return %arg0, %c0_i32, %arg1 : i32, i32, i32
  }
}

</mosaic_0001>

<bundles_post_ra>
// kernel: _lsa_forward.1
= control target key start
LH: loop header
LB: loop body
LE: loop exit
PB: predicated region body
PF: predicated region fallthrough
CT: control target
= control target key end

     0   :  { %s1780_s24 = smov 0   ;;  %s1782_s25 = smov 0   ;;  %s2170_s0 = inlined_call_operand.vmem [shape: f32[2,32,512], index: 0, kind: input, shape index: {}]   ;;  %s2171_s1 = inlined_call_operand.vmem [shape: bf16[72,32], index: 1, kind: input, shape index: {}]   ;;  %s2172_s2 = inlined_call_operand.vmem [shape: f32[72,1], index: 2, kind: input, shape index: {}]   ;;  %s2173_s3 = inlined_call_operand.vmem [shape: bf16[32,32], index: 3, kind: input, shape index: {}]   ;;  %s2174_s4 = inlined_call_operand.vmem [shape: f32[32,1], index: 4, kind: input, shape index: {}]   ;;  %s2175_s5 = inlined_call_operand.vmem [shape: bf16[512,4], index: 5, kind: input, shape index: {}]   ;;  %s2176_s6 = inlined_call_operand.vmem [shape: bf16[4,512], index: 6, kind: input, shape index: {}]   ;;  %s2177_s7 = inlined_call_operand.vmem [shape: f32[2,32,512], index: 7, kind: output, shape index: {}]  }
   0x1   :  { %s1784_s26 = smov 0  }
   0x2 LB: > { %s29_s27 = sadd.s32 1, %s1730_s25  ;;  %p1514_p0 = scmp.ge.s32.totalorder %s1734_s26, 1  ;;  %s1734_s26 = sphi %s1784_s26, %s17_s26   ;;  %s1730_s25 = sphi %s1782_s25, %s2179_s25   ;;  %s1726_s24 = sphi %s1780_s24, %s2178_s24  }
   0x3   : > { %p31_p1 = scmp.ge.s32.totalorder %s29_s27, 2  ;;  %p258_p2 = scmp.lt.s32.totalorder %s1734_s26, 3 }
   0x5   : > { %s2181_s27 = smov (%p31_p1, %s29_s27), 0  ;;  %p259_p3 = pnand %p1514_p0, %p258_p2 }
   0x6   : > { %p299_p4 = scmp.lt.s32.totalorder (!%p259_p3), %s1726_s24, 1  ;;  %v1736_v0 = vmov (!%p259_p3), 0   ;;  %v352_v1 = vld [vmem:[%s2172_s2] sm:$0xff] (!%p259_p3)  ;;  %v353_v5 = vld [vmem:[%s2172_s2 + $0x8] sm:$0xff] (!%p259_p3)  ;;  %v354_v24 = vld [vmem:[%s2172_s2 + $0x10] sm:$0xff] (!%p259_p3)  ;;  %vm429_vm0 = vcmask (!%p259_p3), 261120  }
   0x7   : > { %262 = sbr.rel (%p259_p3) target bundleno = 1288 (0x508), region = 48  ;;  %477 = vmatprep.mubr.bf16.mxu0 (!%p259_p3), %v1736_v0  ;;  %558 = vmatprep.mubr.bf16.mxu1 (!%p259_p3), %v1736_v0  ;;  %v1668_v27 = vld [vmem:[%s2171_s1] sm:$0xff] (!%p259_p3)   ;;  %v1669_v30 = vld [vmem:[%s2171_s1 + $0x8] sm:$0xff] (!%p259_p3)   ;;  %v1670_v31 = vld [vmem:[%s2171_s1 + $0x10] sm:$0xff] (!%p259_p3)   ;;  %v1737_v63 = vmov (!%p259_p3), 1966171168  }
   0x8   : > { %1667 = vset.pattern.permute.xlu1 (!%p259_p3), %v1736_v0  ;;  %1666 = vset.pattern.permute.xlu0 (!%p259_p3), %v1736_v0  ;;  %v360_v28 = vld [vmem:[%s2172_s2 + $0x40] sm:$0xff] (!%p259_p3)  ;;  %v1671_v32 = vld [vmem:[%s2171_s1 + $0x18] sm:$0xff] (!%p259_p3)   ;;  %vm636_vm1 = vcmask (!%p259_p3), 1043456   ;;  %vm1098_vm2 = vcmask (!%p259_p3), 1041408   ;;  %vm1091_vm3 = vcmask (!%p259_p3), 31744  }
   0x9   : > { %363 = vperm.xlu1 (!%p259_p3), %1667, %v352_v1   ;;  %403 = vperm.xlu0 (!%p259_p3), %1666, %v360_v28   ;;  %v1672_v33 = vld [vmem:[%s2171_s1 + $0x20] ss:$0 sps:$4 sm:$0xff] (!%p259_p3)   ;;  %v614_v1 = vunpack.c.l.s4 (!%p259_p3), %v1737_v63 }
   0xa   : > { %v1676_v63 = vld [vmem:[%s2175_s5 + $0x80] sm:$0xff] (!%p259_p3)  }
   0xd   : > { %368 = vperm.xlu1 (!%p259_p3), %1667, %v353_v5  }
   0xe   : > { %s2183_s24 = smov (!%p299_p4, %s1726_s24), 1 }
   0xf   : > { %s1580_s28 = sshll.u32 %s2183_s24, 7 }
  0x10   : > { %s1810_s8 = scalar_lea.vmem %s2170_s0, %s1580_s28  ;;  %s2143_s9 = scalar_lea.vmem %s2177_s7, %s1580_s28 }
  0x11   : > { %v320_v2 = vld [vmem:[%s1810_s8 + $0x8] sm:$0xff]  ;;  %v322_v4 = vld [vmem:[%s1810_s8 + $0x18] sm:$0xff]  ;;  %v319_v8 = vld [vmem:[%s1810_s8] sm:$0xff]  ;;  %373 = vperm.xlu1 %1667, %v354_v24  }
  0x12   : > { %v324_v3 = vld [vmem:[%s1810_s8 + $0x28] sm:$0xff]  ;;  %v326_v7 = vld [vmem:[%s1810_s8 + $0x38] sm:$0xff]  ;;  %v323_v9 = vld [vmem:[%s1810_s8 + $0x20] sm:$0xff] }
  0x13   : > { %v336_v6 = vpack.c.bf16 %v324_v3, %v320_v2  ;;  %v338_v10 = vpack.c.bf16 %v326_v7, %v322_v4  ;;  %v335_v11 = vpack.c.bf16 %v323_v9, %v319_v8  ;;  %v321_v12 = vld [vmem:[%s1810_s8 + $0x10] sm:$0xff]  ;;  %v328_v14 = vld [vmem:[%s1810_s8 + $0x48] sm:$0xff]  ;;  %v330_v17 = vld [vmem:[%s1810_s8 + $0x58] sm:$0xff]  ;;  %v616_v2 = vlaneseq }
  0x14   : > { %v325_v13 = vld [vmem:[%s1810_s8 + $0x30] sm:$0xff]  ;;  %v332_v16 = vld [vmem:[%s1810_s8 + $0x68] sm:$0xff]  ;;  %v334_v18 = vld [vmem:[%s1810_s8 + $0x78] sm:$0xff]  ;;  %v615_v7 = vunpack.c.0.s8 %v614_v1 }
  0x15   : > { %445 = vmatprep.subr.bf16.mxu0 %v336_v6  ;;  %v337_v15 = vpack.c.bf16 %v325_v13, %v321_v12  ;;  %526 = vmatprep.subr.bf16.mxu1 %v338_v10  ;;  %v340_v19 = vpack.c.bf16 %v332_v16, %v328_v14  ;;  %v342_v20 = vpack.c.bf16 %v334_v18, %v330_v17  ;;  %v327_v21 = vld [vmem:[%s1810_s8 + $0x40] sm:$0xff]  ;;  %v329_v23 = vld [vmem:[%s1810_s8 + $0x50] sm:$0xff]  ;;  %v1937_v8 = vshrl.u32 %v616_v2, 7  ;;  %v1677_v1 = vld [vmem:[%s2175_s5 + $0x48] sm:$0xff]  }
  0x16   : > { %446 = vmatpush1.bf16.msra.mxu0 %v335_v11  ;;  %v331_v22 = vld [vmem:[%s1810_s8 + $0x60] sm:$0xff]  ;;  %v333_v26 = vld [vmem:[%s1810_s8 + $0x70] sm:$0xff]  ;;  %v1678_v2 = vld [vmem:[%s2175_s5 + $0xc8] sm:$0xff]  }
  0x17   : > { %527 = vmatpush1.bf16.msra.mxu1 %v337_v15  ;;  %v339_v25 = vpack.c.bf16 %v331_v22, %v327_v21  ;;  %447 = vmatprep.subr.bf16.mxu0 %v340_v19  ;;  %v341_v29 = vpack.c.bf16 %v333_v26, %v329_v23  ;;  %v618_v15 = vsub.s32 %v615_v7, %v1937_v8  ;;  %v1680_v7 = vld [vmem:[%s2175_s5 + $0x88] sm:$0xff]  }
  0x18   : > { %528 = vmatprep.subr.bf16.mxu1 %v342_v20 }
  0x1a   : > { %448 = vmatpush1.bf16.msra.mxu0 %v339_v25 }
  0x1b   : > { %529 = vmatpush1.bf16.msra.mxu1 %v341_v29  ;;  %v357_v29 = vld [vmem:[%s2172_s2 + $0x28] sm:$0xff] }
  0x1d   : > { %1524 = vmatmul.mubr.msk.bf16.vlgmr.msra.gmra.mrb[0].mxu0 %vm429_vm0, %v1668_v27 }
  0x1e   : > { %1529 = vmatmul.mubr.msk.bf16.vlgmr.msra.gmra.mrb[0].mxu1 %vm429_vm0, %v1668_v27  ;;  %487 = vmatprep.mubr.bf16.mxu0 %v1736_v0 }
  0x1f   : > { %568 = vmatprep.mubr.bf16.mxu1 %v1736_v0 }
  0x25   : > { %1525 = vmatmul.mubr.msk.bf16.gmra.mrb[4].mxu0 %vm429_vm0, %v1669_v30 }
  0x26   : > { %1530 = vmatmul.mubr.msk.bf16.gmra.mrb[4].mxu1 %vm429_vm0, %v1669_v30  ;;  %497 = vmatprep.mubr.bf16.mxu0 %v1736_v0  ;;  %v1264_v30 = vld [vmem:[%s2174_s4 + $0x18] sm:$0xff] }
  0x27   : > { %578 = vmatprep.mubr.bf16.mxu1 %v1736_v0 }
  0x2d   : > { %1526 = vmatmul.mubr.msk.bf16.gmra.mrb[8].mxu0 %vm429_vm0, %v1670_v31 }
  0x2e   : > { %1531 = vmatmul.mubr.msk.bf16.gmra.mrb[8].mxu1 %vm429_vm0, %v1670_v31  ;;  %507 = vmatprep.mubr.bf16.mxu0 %v1736_v0  ;;  %v1673_v31 = vld [vmem:[%s2175_s5 + $0x40] sm:$0xff]  }
  0x2f   : > { %588 = vmatprep.mubr.bf16.mxu1 %v1736_v0  ;;  %1582 = vmatprep.subr.bf16.mxu0 %v1673_v31  ;;  %v1695_v31 = vld [vmem:[%s2175_s5 + $0x28] sm:$0xff]  }
  0x35   : > { %1527 = vmatmul.mubr.msk.bf16.gmra.mrb[12].mxu0 %vm429_vm0, %v1671_v32 }
  0x36   : > { %1532 = vmatmul.mubr.msk.bf16.gmra.mrb[12].mxu1 %vm429_vm0, %v1671_v32  ;;  %517 = vmatprep.mubr.bf16.mxu0 %v1736_v0  ;;  %v1674_v32 = vld [vmem:[%s2175_s5 + $0xc0] sm:$0xff]  }
  0x37   : > { %598 = vmatprep.mubr.bf16.mxu1 %v1736_v0  ;;  %1610 = vmatprep.subr.bf16.mxu1 %v1674_v32  ;;  %v1696_v32 = vld [vmem:[%s2175_s5 + $0xa8] sm:$0xff]  }
  0x38   : > { %1611 = vmatpush3.bf16.msra.mxu1 %v1676_v63  ;;  %v1697_v63 = vld [vmem:[%s2175_s5 + $0x70] sm:$0xff]  }
  0x39   : > { %1612 = vmatprep.subr.bf16.mxu1 %v1678_v2  ;;  %v1699_v2 = vld [vmem:[%s2175_s5 + $0x30] sm:$0xff]  }
  0x3c   : > { %1613 = vmatpush3.bf16.msra.mxu1 %v1680_v7  ;;  %v1261_v7 = vld [vmem:[%s2174_s4] sm:$0xff] }
  0x3d   : > { %1528 = vmatmul.mubr.msk.bf16.gmra.mrb[16].mxu0 %vm429_vm0, %v1672_v33 }
  0x3e   : > { %1533 = vmatmul.mubr.msk.bf16.gmra.mrb[16].mxu1 %vm429_vm0, %v1672_v33  ;;  %v1675_v33 = vld [vmem:[%s2175_s5] sm:$0xff]  }
  0x3f   : > { %1583 = vmatpush3.bf16.msra.mxu0 %v1675_v33  ;;  %v359_v33 = vld [vmem:[%s2172_s2 + $0x38] sm:$0xff] }
  0x40   : > { %1584 = vmatprep.subr.bf16.mxu0 %v1677_v1  ;;  %v1698_v1 = vld [vmem:[%s2175_s5 + $0xf0] sm:$0xff]  }
  0x88   : > { %v404_v6 = vpop.permute.xlu0 %403 }
  0xf0   : > { %v1873_v34 = vpop.f32.mrb[0].mxu0 }
  0xf1   : > { %v1875_v35 = vpop.f32.mrb[0].mxu1  ;;  %v1877_v36 = vpop.f32.mrb[1].mxu0 }
  0xf2   : > { %v1879_v37 = vpop.f32.mrb[1].mxu1  ;;  %v1881_v38 = vpop.f32.mrb[2].mxu0 }
  0xf3   : > { %v1883_v39 = vpop.f32.mrb[2].mxu1  ;;  %v1885_v40 = vpop.f32.mrb[3].mxu0 }
  0xf4   : > { %v1887_v41 = vpop.f32.mrb[3].mxu1 }
  0xf8   : > { %v1889_v42 = vpop.f32.mrb[4].mxu0 }
  0xf9   : > { %v1891_v43 = vpop.f32.mrb[4].mxu1  ;;  %v1893_v44 = vpop.f32.mrb[5].mxu0 }
  0xfa   : > { %v1895_v45 = vpop.f32.mrb[5].mxu1  ;;  %v1897_v46 = vpop.f32.mrb[6].mxu0 }
  0xfb   : > { %v1899_v47 = vpop.f32.mrb[6].mxu1  ;;  %v1901_v48 = vpop.f32.mrb[7].mxu0 }
  0xfc   : > { %v1903_v49 = vpop.f32.mrb[7].mxu1 }
 0x100   : > { %v1905_v50 = vpop.f32.mrb[8].mxu0 }
 0x101   : > { %v1907_v51 = vpop.f32.mrb[8].mxu1  ;;  %v1909_v52 = vpop.f32.mrb[9].mxu0 }
 0x102   : > { %v1911_v53 = vpop.f32.mrb[9].mxu1  ;;  %v1913_v54 = vpop.f32.mrb[10].mxu0 }
 0x103   : > { %v1915_v55 = vpop.f32.mrb[10].mxu1  ;;  %v1917_v56 = vpop.f32.mrb[11].mxu0 }
 0x104   : > { %v1919_v57 = vpop.f32.mrb[11].mxu1 }
 0x108   : > { %v1921_v58 = vpop.f32.mrb[12].mxu0 }
 0x109   : > { %v1923_v59 = vpop.f32.mrb[12].mxu1  ;;  %v1925_v60 = vpop.f32.mrb[13].mxu0 }
 0x10a   : > { %v1927_v61 = vpop.f32.mrb[13].mxu1  ;;  %v1929_v62 = vpop.f32.mrb[14].mxu0 }
 0x10b   : > { %v1931_v3 = vpop.f32.mrb[14].mxu1  ;;  %v1933_v4 = vpop.f32.mrb[15].mxu0 }
 0x10c   : > { %v1935_v5 = vpop.f32.mrb[15].mxu1 }
 0x110   : > { %v519_v9 = vpop.f32.mrb[16].mxu0 }
 0x111   : > { %v520_v10 = vadd.f32 %v519_v9, %v404_v6  ;;  %v600_v11 = vpop.f32.mrb[16].mxu1  ;;  %v521_v12 = vpop.f32.mrb[17].mxu0  ;;  %v1681_v9 = vld [vmem:[%s2175_s5 + $0x50] sm:$0xff]  }
 0x112   : > { %v601_v13 = vadd.f32 %v600_v11, %v404_v6  ;;  %v522_v14 = vadd.f32 %v521_v12, %v404_v6  ;;  %v602_v16 = vpop.f32.mrb[17].mxu1  ;;  %v523_v17 = vpop.f32.mrb[18].mxu0  ;;  %v1683_v11 = vld [vmem:[%s2175_s5 + $0x10] sm:$0xff]  }
 0x113   : > { %v603_v18 = vadd.f32 %v602_v16, %v404_v6  ;;  %v604_v19 = vpop.f32.mrb[18].mxu1  ;;  %v524_v20 = vpop.f32.mrb[19].mxu0  ;;  %v1679_v6 = vld [vmem:[%s2175_s5 + $0x8] sm:$0xff]   ;;  %v1684_v12 = vld [vmem:[%s2175_s5 + $0x90] sm:$0xff]  }
 0x114   : > { %v611_v21 = vcombine.low %v520_v10, %v522_v14  ;;  %v605_v22 = vpop.f32.mrb[19].mxu1  ;;  %v1682_v10 = vld [vmem:[%s2175_s5 + $0xd0] sm:$0xff]   ;;  %1585 = vmatpush3.bf16.msra.mxu0 %v1679_v6  ;;  %v1685_v19 = vld [vmem:[%s2175_s5 + $0x58] sm:$0xff]  }
 0x115   : > { %v612_v23 = vcombine.low %v601_v13, %v603_v18  ;;  %1586 = vmatprep.subr.bf16.mxu0 %v1681_v9  ;;  %1614 = vmatprep.subr.bf16.mxu1 %v1682_v10  ;;  %v355_v18 = vld [vmem:[%s2172_s2 + $0x18] sm:$0xff]  ;;  %v1700_v6 = vld [vmem:[%s2175_s5 + $0xb0] sm:$0xff]  }
 0x116   : > { %v619_v24 = vrot.slane %v611_v21, %v618_v15  ;;  %1615 = vmatpush3.bf16.msra.mxu1 %v1684_v12  ;;  %v1686_v20 = vld [vmem:[%s2175_s5 + $0xd8] sm:$0xff]  }
 0x117   : > { %v626_v25 = vrot.slane %v612_v23, %v618_v15  ;;  %v1687_v21 = vld [vmem:[%s2175_s5 + $0x18] sm:$0xff]   ;;  %v356_v23 = vld [vmem:[%s2172_s2 + $0x20] sm:$0xff]  ;;  %1616 = vmatprep.subr.bf16.mxu1 %v1686_v20 }
 0x118   : > { %1587 = vmatpush3.bf16.msra.mxu0 %v1683_v11  ;;  %v1688_v22 = vld [vmem:[%s2175_s5 + $0x98] sm:$0xff]  }
 0x119   : > { %v627_v26 = vcombine.low %v619_v24, %v626_v25  ;;  %1588 = vmatprep.subr.bf16.mxu0 %v1685_v19  ;;  %v1689_v24 = vld [vmem:[%s2175_s5 + $0x60] sm:$0xff]   ;;  %v1701_v9 = vld [vmem:[%s2175_s5 + $0x78] sm:$0xff]  }
 0x11a   : > { %1617 = vmatpush3.bf16.msra.mxu1 %v1688_v22  ;;  %v1690_v25 = vld [vmem:[%s2175_s5 + $0xe0] sm:$0xff]   ;;  %v1702_v10 = vld [vmem:[%s2175_s5 + $0xf8] sm:$0xff]  }
 0x11b   : > { %v634_v27 = vrot.slane %v627_v26, %v618_v15  ;;  %v1691_v26 = vld [vmem:[%s2175_s5 + $0x20] sm:$0xff]   ;;  %1618 = vmatprep.subr.bf16.mxu1 %v1690_v25  ;;  %v1703_v11 = vld [vmem:[%s2175_s5 + $0x38] sm:$0xff]  }
 0x11c   : > { %1589 = vmatpush3.bf16.msra.mxu0 %v1687_v21  ;;  %v1704_v12 = vld [vmem:[%s2175_s5 + $0xb8] sm:$0xff]  }
 0x11d   : > { %v637_v28 = vsel %vm636_vm1, %v634_v27, -inf  ;;  %1590 = vmatprep.subr.bf16.mxu0 %v1689_v24 }
 0x11e   : > { %638 = vmax.xlane.f32.xlu0 %v637_v28  ;;  %v358_v28 = vld [vmem:[%s2172_s2 + $0x30] sm:$0xff] }
 0x120   : > { %1591 = vmatpush3.bf16.msra.mxu0 %v1691_v26 }
 0x134   : > { %388 = vperm.xlu0 %1666, %v357_v29   ;;  %v1693_v29 = vld [vmem:[%s2175_s5 + $0x68] sm:$0xff]  }
 0x135   : > { %1592 = vmatprep.subr.bf16.mxu0 %v1693_v29 }
 0x136   : > { %1593 = vmatpush3.bf16.msra.mxu0 %v1695_v31 }
 0x137   : > { %1594 = vmatprep.subr.bf16.mxu0 %v1697_v63 }
 0x138   : > { %1282 = vperm.xlu0 %1666, %v1264_v30   ;;  %v1694_v30 = vld [vmem:[%s2175_s5 + $0xe8] sm:$0xff]  }
 0x13a   : > { %1595 = vmatpush3.bf16.msra.mxu0 %v1699_v2 }
 0x13b   : > { %1596 = vmatprep.subr.bf16.mxu0 %v1701_v9 }
 0x13e   : > { %1597 = vmatpush3.bf16.msra.mxu0 %v1703_v11  ;;  %v662_v11 = vsub.s32 2, %v1937_v8 }
 0x1ab   : > { %v639_v13 = vpop.xlane.xlu0 %638 }
 0x1ac   : > { %v640_v14 = vsub.f32 %v634_v27, %v639_v13  ;;  %v1692_v27 = vld [vmem:[%s2175_s5 + $0xa0] sm:$0xff]   ;;  %v1262_v13 = vld [vmem:[%s2174_s4 + $0x8] sm:$0xff] }
 0x1ad   : > { %1619 = vmatpush3.bf16.msra.mxu1 %v1692_v27 }
 0x1ae   : > { %v641_v15 = vmul.f32 1.442695, %v640_v14  ;;  %1620 = vmatprep.subr.bf16.mxu1 %v1694_v30  ;;  %v1263_v14 = vld [vmem:[%s2174_s4 + $0x10] sm:$0xff] }
 0x1b0   : > { %1708 = vpow2.f32 %v641_v15  ;;  %v1072_v15 = vld [vmem:[%s2176_s6] sm:$0xff] }
 0x1b1   : > { %1621 = vmatpush3.bf16.msra.mxu1 %v1696_v32  ;;  %v1074_v20 = vcombine.high %v1072_v15, %v1072_v15  ;;  %v1739_v32 = vmov 1935823168  }
 0x1b2   : > { %1622 = vmatprep.subr.bf16.mxu1 %v1698_v1 }
 0x1b5   : > { %1623 = vmatpush3.bf16.msra.mxu1 %v1700_v6  ;;  %v658_v6 = vsub.s32 0, %v1937_v8 }
 0x1b6   : > { %1624 = vmatprep.subr.bf16.mxu1 %v1702_v10  ;;  %v670_v10 = vsub.s32 6, %v1937_v8 }
 0x1b9   : > { %1625 = vmatpush3.bf16.msra.mxu1 %v1704_v12 }
 0x1ba   : > { %v1983_v16 = vpop.eup %1708 }
 0x1bb   : > { %v643_v17 = vsel %vm636_vm1, %v1983_v16, 0.0 }
 0x1bc   : > { %644 = vadd.xlane.f32.xlu1 %v643_v17  ;;  %v1738_v17 = vmov 1983009808  }
 0x1cd   : > { %378 = vperm.xlu1 %1667, %v355_v18   ;;  %v1076_v18 = vunpack.c.l.s4 %v1738_v17 }
 0x1cf   : > { %v1077_v19 = vunpack.c.0.s8 %v1076_v18 }
 0x1d1   : > { %383 = vperm.xlu1 %1667, %v356_v23   ;;  %v1080_v21 = vsub.s32 %v1077_v19, %v1937_v8 }
 0x1d3   : > { %v1081_v22 = vrot.slane %v1072_v15, %v1080_v21  ;;  %v1088_v23 = vrot.slane %v1074_v20, %v1080_v21 }
 0x1d5   : > { %393 = vperm.xlu1 %1667, %v358_v28   ;;  %v1089_v24 = vcombine.high %v1081_v22, %v1081_v22  ;;  %v1090_v25 = vcombine.high %v1088_v23, %v1088_v23  ;;  %v2072_v26 = vsel %vm1098_vm2, %v1081_v22, 0  ;;  %v2074_v27 = vsel %vm1098_vm2, %v1088_v23, 0  ;;  %v364_v28 = vpop.permute.xlu1 %363 }
 0x1d6   : > { %v480_v12 = vadd.f32 %v1873_v34, %v364_v28  ;;  %v563_v15 = vadd.f32 %v1879_v37, %v364_v28 }
 0x1d7   : > { %1566 = vmatprep.subr.msk.bf16.mxu0 %vm1098_vm2, %v1089_v24  ;;  %1569 = vmatprep.subr.msk.bf16.mxu1 %vm1098_vm2, %v1090_v25 }
 0x1d9   : > { %398 = vperm.xlu1 %1667, %v359_v33   ;;  %v369_v29 = vpop.permute.xlu1 %368  ;;  %v649_v33 = vunpack.c.l.s4 %v1739_v32 }
 0x1da   : > { %v484_v18 = vadd.f32 %v1881_v38, %v369_v29  ;;  %v565_v19 = vadd.f32 %v1883_v39, %v369_v29  ;;  %v486_v20 = vadd.f32 %v1885_v40, %v369_v29 }
 0x1db   : > { %v650_v63 = vunpack.c.0.s8 %v649_v33 }
 0x1dd   : > { %1267 = vperm.xlu1 %1667, %v1261_v7   ;;  %v374_v30 = vpop.permute.xlu1 %373  ;;  %v653_v1 = vsub.s32 %v650_v63, %v1937_v8  ;;  %v666_v7 = vsub.s32 4, %v1937_v8 }
 0x1de   : > { %v492_v37 = vadd.f32 %v1893_v44, %v374_v30  ;;  %v573_v24 = vadd.f32 %v1895_v45, %v374_v30 }
 0x1e1   : > { %1272 = vperm.xlu1 %1667, %v1262_v13   ;;  %v561_v13 = vadd.f32 %v1875_v35, %v364_v28  ;;  %v490_v35 = vadd.f32 %v1889_v42, %v374_v30 }
 0x1e5   : > { %1277 = vperm.xlu1 %1667, %v1263_v14   ;;  %v482_v14 = vadd.f32 %v1877_v36, %v364_v28  ;;  %v571_v36 = vadd.f32 %v1891_v43, %v374_v30 }
 0x249   : > { %v645_v31 = vpop.xlane.xlu1 %644 }
 0x24a   : > { %1710 = vrcp.f32 %v645_v31 }
 0x24d   : > { %v379_v8 = vpop.permute.xlu1 %378 }
 0x24e   : > { %v494_v40 = vadd.f32 %v1897_v46, %v379_v8  ;;  %v577_v31 = vadd.f32 %v1903_v49, %v379_v8 }
 0x254   : > { %v1711_v2 = vpop.eup %1710 }
 0x255   : > { %v647_v9 = vmul.f32 %v1711_v2, %v1983_v16  ;;  %v567_v16 = vadd.f32 %v1887_v41, %v369_v29  ;;  %v496_v41 = vadd.f32 %v1901_v48, %v379_v8  ;;  %v575_v29 = vadd.f32 %v1899_v47, %v379_v8 }
 0x257   : > { %v654_v17 = vrot.slane %v647_v9, %v653_v1 }
 0x259   : > { %v659_v21 = vrot.slane %v654_v17, %v658_v6  ;;  %v667_v22 = vrot.slane %v654_v17, %v666_v7  ;;  %v671_v23 = vrot.slane %v654_v17, %v670_v10  ;;  %v663_v34 = vrot.slane %v654_v17, %v662_v11 }
 0x25b   : > { %v691_v38 = vrot.slane %v671_v23, %v658_v6  ;;  %v683_v25 = vrot.slane %v663_v34, %v658_v6  ;;  %v679_v39 = vrot.slane %v659_v21, %v658_v6  ;;  %v687_v28 = vrot.slane %v667_v22, %v658_v6 }
 0x25d   : > { %v695_v32 = vmul.f32 %v691_v38, %v563_v15  ;;  %v699_v42 = vmul.f32 %v691_v38, %v567_v16  ;;  %v693_v33 = vmul.f32 %v683_v25, %v482_v14  ;;  %v697_v43 = vmul.f32 %v683_v25, %v486_v20 }
 0x25e   : > { %v692_v63 = vmul.f32 %v679_v39, %v480_v12  ;;  %v696_v44 = vmul.f32 %v679_v39, %v484_v18  ;;  %v694_v1 = vmul.f32 %v687_v28, %v561_v13  ;;  %v698_v45 = vmul.f32 %v687_v28, %v565_v19 }
 0x25f   : > { %v711_v30 = vpack.c.bf16 %v699_v42, %v695_v32  ;;  %v709_v2 = vpack.c.bf16 %v697_v43, %v693_v33  ;;  %v701_v7 = vmul.f32 %v683_v25, %v492_v37  ;;  %v705_v6 = vmul.f32 %v683_v25, %v496_v41 }
 0x260   : > { %v708_v9 = vpack.c.bf16 %v696_v44, %v692_v63  ;;  %v710_v46 = vpack.c.bf16 %v698_v45, %v694_v1  ;;  %v703_v10 = vmul.f32 %v691_v38, %v573_v24  ;;  %v707_v48 = vmul.f32 %v691_v38, %v577_v31  ;;  %v384_v45 = vpop.permute.xlu1 %383 }
 0x261   : > { %1053 = vmatprep.mubr.bf16.mxu1 %v711_v30  ;;  %1004 = vmatprep.mubr.bf16.mxu0 %v709_v2  ;;  %v713_v47 = vpack.c.bf16 %v705_v6, %v701_v7  ;;  %v700_v49 = vmul.f32 %v679_v39, %v490_v35  ;;  %v704_v11 = vmul.f32 %v679_v39, %v494_v40  ;;  %v389_v2 = vpop.permute.xlu0 %388 }
 0x262   : > { %1005 = vmatmul.mubr.bf16.vlgmr.msra.gmra.mrb[20].mxu0 %v708_v9  ;;  %1054 = vmatmul.mubr.bf16.vlgmr.msra.gmra.mrb[20].mxu1 %v710_v46  ;;  %v715_v14 = vpack.c.bf16 %v707_v48, %v703_v10  ;;  %v702_v12 = vmul.f32 %v687_v28, %v571_v36  ;;  %v706_v15 = vmul.f32 %v687_v28, %v575_v29 }
 0x263   : > { %1012 = vmatprep.mubr.bf16.mxu0 %v713_v47  ;;  %v712_v13 = vpack.c.bf16 %v704_v11, %v700_v49  ;;  %1112 = vmatpush1.bf16.msra.mxu0 %v2072_v26  ;;  %v500_v7 = vadd.f32 %v1905_v50, %v384_v45  ;;  %v581_v6 = vadd.f32 %v1907_v51, %v384_v45 }
 0x264   : > { %1061 = vmatprep.mubr.bf16.mxu1 %v715_v14  ;;  %v714_v17 = vpack.c.bf16 %v706_v15, %v702_v12  ;;  %1165 = vmatpush1.bf16.msra.mxu1 %v2074_v27  ;;  %v394_v30 = vpop.permute.xlu1 %393  ;;  %v502_v9 = vadd.f32 %v1909_v52, %v384_v45  ;;  %v583_v46 = vadd.f32 %v1911_v53, %v384_v45 }
 0x265   : > { %v504_v10 = vadd.f32 %v1913_v54, %v389_v2  ;;  %v585_v48 = vadd.f32 %v1915_v55, %v389_v2  ;;  %v506_v47 = vadd.f32 %v1917_v56, %v389_v2  ;;  %v587_v49 = vadd.f32 %v1919_v57, %v389_v2 }
 0x266   : > { %v1217_v14 = vmax.f32 %v500_v7, 0.0  ;;  %v1219_v12 = vmax.f32 %v581_v6, 0.0  ;;  %v1218_v50 = vmax.f32 %v502_v9, 0.0 }
 0x267   : > { %v1221_v53 = vmax.f32 %v504_v10, 0.0  ;;  %v1222_v56 = vmax.f32 %v506_v47, 0.0 }
 0x268   : > { %v399_v11 = vpop.permute.xlu1 %398 }
 0x26a   : > { %1013 = vmatmul.mubr.bf16.gmra.mrb[24].mxu0 %v712_v13  ;;  %1062 = vmatmul.mubr.bf16.gmra.mrb[24].mxu1 %v714_v17  ;;  %v1220_v17 = vmax.f32 %v583_v46, 0.0 }
 0x26b   : > { %1143 = vmatprep.mubr.bf16.mxu0 %v1736_v0  ;;  %1196 = vmatprep.mubr.bf16.mxu1 %v1736_v0 }
 0x335   : > { %v1598_v18 = vpop.f32.mrb[20].mxu0  ;;  %v1626_v19 = vpop.f32.mrb[20].mxu1 }
 0x336   : > { %v1599_v20 = vpop.f32.mrb[21].mxu0  ;;  %v1627_v16 = vpop.f32.mrb[21].mxu1 }
 0x337   : > { %v1600_v21 = vadd.f32 %v1599_v20, %v1598_v18  ;;  %v1628_v22 = vadd.f32 %v1627_v16, %v1626_v19  ;;  %v1601_v8 = vpop.f32.mrb[22].mxu0  ;;  %v1629_v23 = vpop.f32.mrb[22].mxu1  ;;  %v1223_v20 = vmax.f32 %v585_v48, 0.0 }
 0x338   : > { %v1602_v34 = vpop.f32.mrb[23].mxu0  ;;  %v1630_v26 = vpop.f32.mrb[23].mxu1 }
 0x339   : > { %v1056_v35 = vadd.f32 %v1628_v22, %v1600_v21  ;;  %v1603_v36 = vadd.f32 %v1602_v34, %v1601_v8  ;;  %v1631_v37 = vadd.f32 %v1630_v26, %v1629_v23  ;;  %v1224_v22 = vmax.f32 %v587_v49, 0.0 }
 0x33a   : > { %v510_v26 = vadd.f32 %v1921_v58, %v394_v30  ;;  %v597_v58 = vadd.f32 %v1935_v5, %v399_v11 }
 0x33b   : > { %v1059_v27 = vadd.f32 %v1631_v37, %v1603_v36 }
 0x33c   : > { %v1232_v2 = vmax.f32 %v597_v58, 0.0 }
 0x33d   : > { %v1070_v24 = vpack.c.bf16 %v1059_v27, %v1056_v35  ;;  %v1604_v38 = vpop.f32.mrb[24].mxu0  ;;  %v1632_v25 = vpop.f32.mrb[24].mxu1  ;;  %v591_v35 = vadd.f32 %v1923_v59, %v394_v30  ;;  %v512_v27 = vadd.f32 %v1925_v60, %v394_v30 }
 0x33e   : > { %v1605_v39 = vpop.f32.mrb[25].mxu0  ;;  %v1633_v28 = vpop.f32.mrb[25].mxu1 }
 0x33f   : > { %v1606_v40 = vadd.f32 %v1605_v39, %v1604_v38  ;;  %v1634_v41 = vadd.f32 %v1633_v28, %v1632_v25  ;;  %v1607_v29 = vpop.f32.mrb[26].mxu0  ;;  %v1635_v31 = vpop.f32.mrb[26].mxu1  ;;  %1567 = vmatmul.mubr.msk.bf16.vlgmr.msra.gmra.mrb[28].mxu0 %vm1091_vm3, %v1070_v24  ;;  %1570 = vmatmul.mubr.msk.bf16.vlgmr.msra.gmra.mrb[28].mxu1 %vm1091_vm3, %v1070_v24  ;;  %v593_v24 = vadd.f32 %v1927_v61, %v394_v30  ;;  %v1227_v59 = vmax.f32 %v591_v35, 0.0 }
 0x340   : > { %v1608_v32 = vpop.f32.mrb[27].mxu0  ;;  %v1636_v42 = vpop.f32.mrb[27].mxu1  ;;  %1153 = vmatprep.mubr.bf16.mxu0 %v1736_v0  ;;  %1206 = vmatprep.mubr.bf16.mxu1 %v1736_v0  ;;  %v514_v39 = vadd.f32 %v1929_v62, %v399_v11  ;;  %v595_v28 = vadd.f32 %v1931_v3, %v399_v11  ;;  %v1226_v60 = vmax.f32 %v512_v27, 0.0 }
 0x341   : > { %v1064_v33 = vadd.f32 %v1634_v41, %v1606_v40  ;;  %v1609_v43 = vadd.f32 %v1608_v32, %v1607_v29  ;;  %v1637_v63 = vadd.f32 %v1636_v42, %v1635_v31  ;;  %v516_v29 = vadd.f32 %v1933_v4, %v399_v11 }
 0x342   : > { %v1225_v31 = vmax.f32 %v510_v26, 0.0  ;;  %v1228_v61 = vmax.f32 %v593_v24, 0.0  ;;  %v1229_v3 = vmax.f32 %v514_v39, 0.0 }
 0x343   : > { %v1067_v44 = vadd.f32 %v1637_v63, %v1609_v43  ;;  %v1230_v30 = vmax.f32 %v516_v29, 0.0 }
 0x345   : > { %v1071_v1 = vpack.c.bf16 %v1067_v44, %v1064_v33  ;;  %v1231_v44 = vmax.f32 %v595_v28, 0.0 }
 0x347   : > { %1568 = vmatmul.mubr.msk.bf16.gmra.mrb[32].mxu0 %vm1091_vm3, %v1071_v1  ;;  %1571 = vmatmul.mubr.msk.bf16.gmra.mrb[32].mxu1 %vm1091_vm3, %v1071_v1 }
 0x348   : > { %1333 = vmatprep.mubr.bf16.mxu0 %v1736_v0  ;;  %1386 = vmatprep.mubr.bf16.mxu1 %v1736_v0 }
 0x412   : > { %v1145_v15 = vpop.f32.mrb[28].mxu0  ;;  %v1198_v13 = vpop.f32.mrb[28].mxu1 }
 0x413   : > { %v1233_v51 = vmul.f32 %v1217_v14, %v1145_v15  ;;  %v1235_v18 = vmul.f32 %v1219_v12, %v1198_v13  ;;  %v1147_v52 = vpop.f32.mrb[29].mxu0  ;;  %v1200_v19 = vpop.f32.mrb[29].mxu1  ;;  %v1706_v12 = vld [vmem:[%s2173_s3] sm:$0xff]   ;;  %v1707_v15 = vld [vmem:[%s2173_s3 + $0x8] sm:$0xff]  }
 0x414   : > { %v1234_v54 = vmul.f32 %v1218_v50, %v1147_v52  ;;  %v1236_v16 = vmul.f32 %v1220_v17, %v1200_v19  ;;  %v1149_v55 = vpop.f32.mrb[30].mxu0  ;;  %v1202_v21 = vpop.f32.mrb[30].mxu1 }
 0x415   : > { %v1237_v57 = vmul.f32 %v1221_v53, %v1149_v55  ;;  %v1239_v8 = vmul.f32 %v1223_v20, %v1202_v21  ;;  %v1151_v23 = vpop.f32.mrb[31].mxu0  ;;  %v1204_v34 = vpop.f32.mrb[31].mxu1 }
 0x416   : > { %v1238_v36 = vmul.f32 %v1222_v56, %v1151_v23  ;;  %v1240_v37 = vmul.f32 %v1224_v22, %v1204_v34  ;;  %v1268_v13 = vpop.permute.xlu1 %1267  ;;  %v1283_v23 = vpop.permute.xlu0 %1282 }
 0x417   : > { %v1253_v38 = vpack.c.bf16 %v1237_v57, %v1233_v51  ;;  %v1255_v25 = vpack.c.bf16 %v1239_v8, %v1235_v18 }
 0x418   : > { %v1254_v40 = vpack.c.bf16 %v1238_v36, %v1234_v54  ;;  %v1256_v41 = vpack.c.bf16 %v1240_v37, %v1236_v16 }
 0x41a   : > { %v1155_v32 = vpop.f32.mrb[32].mxu0  ;;  %v1208_v42 = vpop.f32.mrb[32].mxu1  ;;  %1301 = vmatprep.subr.bf16.mxu0 %v1254_v40  ;;  %1354 = vmatprep.subr.bf16.mxu1 %v1256_v41 }
 0x41b   : > { %v1241_v33 = vmul.f32 %v1225_v31, %v1155_v32  ;;  %v1243_v43 = vmul.f32 %v1227_v59, %v1208_v42  ;;  %v1157_v63 = vpop.f32.mrb[33].mxu0  ;;  %v1210_v62 = vpop.f32.mrb[33].mxu1  ;;  %1302 = vmatpush1.bf16.msra.mxu0 %v1253_v38  ;;  %1355 = vmatpush1.bf16.msra.mxu1 %v1255_v25 }
 0x41c   : > { %v1242_v1 = vmul.f32 %v1226_v60, %v1157_v63  ;;  %v1244_v4 = vmul.f32 %v1228_v61, %v1210_v62  ;;  %v1159_v45 = vpop.f32.mrb[34].mxu0  ;;  %v1212_v5 = vpop.f32.mrb[34].mxu1 }
 0x41d   : > { %v1245_v7 = vmul.f32 %v1229_v3, %v1159_v45  ;;  %v1247_v6 = vmul.f32 %v1231_v44, %v1212_v5  ;;  %v1161_v9 = vpop.f32.mrb[35].mxu0  ;;  %v1214_v46 = vpop.f32.mrb[35].mxu1 }
 0x41e   : > { %v1246_v10 = vmul.f32 %v1230_v30, %v1161_v9  ;;  %v1248_v48 = vmul.f32 %v1232_v2, %v1214_v46  ;;  %v1273_v50 = vpop.permute.xlu1 %1272 }
 0x41f   : > { %v1257_v47 = vpack.c.bf16 %v1245_v7, %v1241_v33  ;;  %v1259_v49 = vpack.c.bf16 %v1247_v6, %v1243_v43 }
 0x420   : > { %v1258_v11 = vpack.c.bf16 %v1246_v10, %v1242_v1  ;;  %v1260_v14 = vpack.c.bf16 %v1248_v48, %v1244_v4 }
 0x422   : > { %1303 = vmatprep.subr.bf16.mxu0 %v1258_v11  ;;  %1356 = vmatprep.subr.bf16.mxu1 %v1260_v14  ;;  %v1278_v34 = vpop.permute.xlu1 %1277 }
 0x423   : > { %1304 = vmatpush1.bf16.msra.mxu0 %v1257_v47  ;;  %1357 = vmatpush1.bf16.msra.mxu1 %v1259_v49 }
 0x426   : > { %1574 = vmatmul.mubr.msk.bf16.vlgmr.msra.gmra.mrb[36].mxu0 %vm429_vm0, %v1706_v12  ;;  %1576 = vmatmul.mubr.msk.bf16.vlgmr.msra.gmra.mrb[36].mxu1 %vm429_vm0, %v1706_v12 }
 0x427   : > { %1343 = vmatprep.mubr.bf16.mxu0 %v1736_v0  ;;  %1396 = vmatprep.mubr.bf16.mxu1 %v1736_v0 }
 0x42e   : > { %1575 = vmatmul.mubr.msk.bf16.gmra.mrb[40].mxu0 %vm429_vm0, %v1707_v15  ;;  %1577 = vmatmul.mubr.msk.bf16.gmra.mrb[40].mxu1 %vm429_vm0, %v1707_v15 }
 0x4f9   : > { %v1335_v17 = vpop.f32.mrb[36].mxu0  ;;  %v1388_v0 = vpop.f32.mrb[36].mxu1 }
 0x4fa   : > { %v1336_v51 = vadd.f32 %v1335_v17, %v1268_v13  ;;  %v1389_v18 = vadd.f32 %v1388_v0, %v1268_v13  ;;  %v1337_v52 = vpop.f32.mrb[37].mxu0  ;;  %v1390_v19 = vpop.f32.mrb[37].mxu1 }
 0x4fb   : > { %v1338_v53 = vadd.f32 %v1337_v52, %v1268_v13  ;;  %v1391_v20 = vadd.f32 %v1390_v19, %v1268_v13  ;;  %v1339_v54 = vpop.f32.mrb[38].mxu0  ;;  %v1392_v16 = vpop.f32.mrb[38].mxu1 }
 0x4fc   : > { %1407 = vst [vmem:[%s2143_s9] sm:$0xff] %v1336_v51  ;;  %1409 = vst [vmem:[%s2143_s9 + $0x10] sm:$0xff] %v1389_v18  ;;  %v1340_v55 = vadd.f32 %v1339_v54, %v1273_v50  ;;  %v1393_v21 = vadd.f32 %v1392_v16, %v1273_v50  ;;  %v1341_v56 = vpop.f32.mrb[39].mxu0  ;;  %v1394_v22 = vpop.f32.mrb[39].mxu1 }
 0x4fd   : > { %1408 = vst [vmem:[%s2143_s9 + $0x8] sm:$0xff] %v1338_v53  ;;  %1410 = vst [vmem:[%s2143_s9 + $0x18] sm:$0xff] %v1391_v20  ;;  %v1342_v57 = vadd.f32 %v1341_v56, %v1273_v50  ;;  %v1395_v8 = vadd.f32 %v1394_v22, %v1273_v50 }
 0x4fe   : > { %1411 = vst [vmem:[%s2143_s9 + $0x20] sm:$0xff] %v1340_v55  ;;  %1413 = vst [vmem:[%s2143_s9 + $0x30] sm:$0xff] %v1393_v21 }
 0x4ff   : > { %1412 = vst [vmem:[%s2143_s9 + $0x28] sm:$0xff] %v1342_v57  ;;  %1414 = vst [vmem:[%s2143_s9 + $0x38] sm:$0xff] %v1395_v8 }
 0x501   : > { %v1345_v26 = vpop.f32.mrb[40].mxu0  ;;  %v1398_v35 = vpop.f32.mrb[40].mxu1 }
 0x502   : > { %v1346_v36 = vadd.f32 %v1345_v26, %v1278_v34  ;;  %v1399_v37 = vadd.f32 %v1398_v35, %v1278_v34  ;;  %v1347_v27 = vpop.f32.mrb[41].mxu0  ;;  %v1400_v24 = vpop.f32.mrb[41].mxu1 }
 0x503   : > { %v1348_v38 = vadd.f32 %v1347_v27, %v1278_v34  ;;  %v1401_v25 = vadd.f32 %v1400_v24, %v1278_v34  ;;  %v1349_v39 = vpop.f32.mrb[42].mxu0  ;;  %v1402_v28 = vpop.f32.mrb[42].mxu1 }
 0x504   : > { %1415 = vst [vmem:[%s2143_s9 + $0x40] sm:$0xff] %v1346_v36  ;;  %1417 = vst [vmem:[%s2143_s9 + $0x50] sm:$0xff] %v1399_v37  ;;  %v1350_v40 = vadd.f32 %v1349_v39, %v1283_v23  ;;  %v1403_v41 = vadd.f32 %v1402_v28, %v1283_v23  ;;  %v1351_v29 = vpop.f32.mrb[43].mxu0  ;;  %v1404_v58 = vpop.f32.mrb[43].mxu1 }
 0x505   : > { %1416 = vst [vmem:[%s2143_s9 + $0x48] sm:$0xff] %v1348_v38  ;;  %1418 = vst [vmem:[%s2143_s9 + $0x58] sm:$0xff] %v1401_v25  ;;  %v1352_v31 = vadd.f32 %v1351_v29, %v1283_v23  ;;  %v1405_v59 = vadd.f32 %v1404_v58, %v1283_v23 }
 0x506   : > { %1419 = vst [vmem:[%s2143_s9 + $0x60] sm:$0xff] %v1350_v40  ;;  %1421 = vst [vmem:[%s2143_s9 + $0x70] sm:$0xff] %v1403_v41 }
 0x507   : > { %1420 = vst [vmem:[%s2143_s9 + $0x68] sm:$0xff] %v1352_v31  ;;  %1422 = vst [vmem:[%s2143_s9 + $0x78] sm:$0xff] %v1405_v59 }
 0x508 PF: > { %s17_s26 = sadd.s32 1, %s1734_s26   ;;  %s2178_s24 = smov %s1730_s25 }
 0x509   : > { %p14_p5 = scmp.ge.s32.totalorder %s17_s26, 4   ;;  %s2179_s25 = smov %s2181_s27 }
 0x50b   :  { %16 = sbr.rel (!%p14_p5) target bundleno = 2 (0x2), region = 78 }

// kernel: _lsa_forward.1
= control target key start
LH: loop header
LB: loop body
LE: loop exit
PB: predicated region body
PF: predicated region fallthrough
CT: control target
= control target key end

     0   :  { %s1780_s24 = smov 0   ;;  %s1782_s25 = smov 0   ;;  %s2170_s0 = inlined_call_operand.vmem [shape: f32[2,32,512], index: 0, kind: input, shape index: {}]   ;;  %s2171_s1 = inlined_call_operand.vmem [shape: bf16[72,32], index: 1, kind: input, shape index: {}]   ;;  %s2172_s2 = inlined_call_operand.vmem [shape: f32[72,1], index: 2, kind: input, shape index: {}]   ;;  %s2173_s3 = inlined_call_operand.vmem [shape: bf16[32,32], index: 3, kind: input, shape index: {}]   ;;  %s2174_s4 = inlined_call_operand.vmem [shape: f32[32,1], index: 4, kind: input, shape index: {}]   ;;  %s2175_s5 = inlined_call_operand.vmem [shape: bf16[512,4], index: 5, kind: input, shape index: {}]   ;;  %s2176_s6 = inlined_call_operand.vmem [shape: bf16[4,512], index: 6, kind: input, shape index: {}]   ;;  %s2177_s7 = inlined_call_operand.vmem [shape: f32[2,32,512], index: 7, kind: output, shape index: {}]  }
   0x1   :  { %s1784_s26 = smov 0  }
   0x2 LB: > { %s29_s27 = sadd.s32 1, %s1730_s25  ;;  %p1514_p0 = scmp.ge.s32.totalorder %s1734_s26, 1  ;;  %s1734_s26 = sphi %s1784_s26, %s17_s26   ;;  %s1730_s25 = sphi %s1782_s25, %s2179_s25   ;;  %s1726_s24 = sphi %s1780_s24, %s2178_s24  }
   0x3   : > { %p31_p1 = scmp.ge.s32.totalorder %s29_s27, 2  ;;  %p258_p2 = scmp.lt.s32.totalorder %s1734_s26, 3 }
   0x5   : > { %s2181_s27 = smov (%p31_p1, %s29_s27), 0  ;;  %p259_p3 = pnand %p1514_p0, %p258_p2 }
   0x6   : > { %p299_p4 = scmp.lt.s32.totalorder (!%p259_p3), %s1726_s24, 1  ;;  %v1736_v0 = vmov (!%p259_p3), 0   ;;  %v352_v1 = vld [vmem:[%s2172_s2] sm:$0xff] (!%p259_p3)  ;;  %v353_v5 = vld [vmem:[%s2172_s2 + $0x8] sm:$0xff] (!%p259_p3)  ;;  %v354_v24 = vld [vmem:[%s2172_s2 + $0x10] sm:$0xff] (!%p259_p3)  ;;  %vm429_vm0 = vcmask (!%p259_p3), 261120  }
   0x7   : > { %262 = sbr.rel (%p259_p3) target bundleno = 1288 (0x508), region = 48  ;;  %477 = vmatprep.mubr.bf16.mxu0 (!%p259_p3), %v1736_v0  ;;  %558 = vmatprep.mubr.bf16.mxu1 (!%p259_p3), %v1736_v0  ;;  %v1668_v27 = vld [vmem:[%s2171_s1] sm:$0xff] (!%p259_p3)   ;;  %v1669_v30 = vld [vmem:[%s2171_s1 + $0x8] sm:$0xff] (!%p259_p3)   ;;  %v1670_v31 = vld [vmem:[%s2171_s1 + $0x10] sm:$0xff] (!%p259_p3)   ;;  %v1737_v63 = vmov (!%p259_p3), 1966171168  }
   0x8   : > { %1667 = vset.pattern.permute.xlu1 (!%p259_p3), %v1736_v0  ;;  %1666 = vset.pattern.permute.xlu0 (!%p259_p3), %v1736_v0  ;;  %v360_v28 = vld [vmem:[%s2172_s2 + $0x40] sm:$0xff] (!%p259_p3)  ;;  %v1671_v32 = vld [vmem:[%s2171_s1 + $0x18] sm:$0xff] (!%p259_p3)   ;;  %vm636_vm1 = vcmask (!%p259_p3), 1043456   ;;  %vm1098_vm2 = vcmask (!%p259_p3), 1041408   ;;  %vm1091_vm3 = vcmask (!%p259_p3), 31744  }
   0x9   : > { %363 = vperm.xlu1 (!%p259_p3), %1667, %v352_v1   ;;  %403 = vperm.xlu0 (!%p259_p3), %1666, %v360_v28   ;;  %v1672_v33 = vld [vmem:[%s2171_s1 + $0x20] ss:$0 sps:$4 sm:$0xff] (!%p259_p3)   ;;  %v614_v1 = vunpack.c.l.s4 (!%p259_p3), %v1737_v63 }
   0xa   : > { %v1676_v63 = vld [vmem:[%s2175_s5 + $0x80] sm:$0xff] (!%p259_p3)  }
   0xd   : > { %368 = vperm.xlu1 (!%p259_p3), %1667, %v353_v5  }
   0xe   : > { %s2183_s24 = smov (!%p299_p4, %s1726_s24), 1 }
   0xf   : > { %s1580_s28 = sshll.u32 %s2183_s24, 7 }
  0x10   : > { %s1810_s8 = scalar_lea.vmem %s2170_s0, %s1580_s28  ;;  %s2143_s9 = scalar_lea.vmem %s2177_s7, %s1580_s28 }
  0x11   : > { %v320_v2 = vld [vmem:[%s1810_s8 + $0x8] sm:$0xff]  ;;  %v322_v4 = vld [vmem:[%s1810_s8 + $0x18] sm:$0xff]  ;;  %v319_v8 = vld [vmem:[%s1810_s8] sm:$0xff]  ;;  %373 = vperm.xlu1 %1667, %v354_v24  }
  0x12   : > { %v324_v3 = vld [vmem:[%s1810_s8 + $0x28] sm:$0xff]  ;;  %v326_v7 = vld [vmem:[%s1810_s8 + $0x38] sm:$0xff]  ;;  %v323_v9 = vld [vmem:[%s1810_s8 + $0x20] sm:$0xff] }
  0x13   : > { %v336_v6 = vpack.c.bf16 %v324_v3, %v320_v2  ;;  %v338_v10 = vpack.c.bf16 %v326_v7, %v322_v4  ;;  %v335_v11 = vpack.c.bf16 %v323_v9, %v319_v8  ;;  %v321_v12 = vld [vmem:[%s1810_s8 + $0x10] sm:$0xff]  ;;  %v328_v14 = vld [vmem:[%s1810_s8 + $0x48] sm:$0xff]  ;;  %v330_v17 = vld [vmem:[%s1810_s8 + $0x58] sm:$0xff]  ;;  %v616_v2 = vlaneseq }
  0x14   : > { %v325_v13 = vld [vmem:[%s1810_s8 + $0x30] sm:$0xff]  ;;  %v332_v16 = vld [vmem:[%s1810_s8 + $0x68] sm:$0xff]  ;;  %v334_v18 = vld [vmem:[%s1810_s8 + $0x78] sm:$0xff]  ;;  %v615_v7 = vunpack.c.0.s8 %v614_v1 }
  0x15   : > { %445 = vmatprep.subr.bf16.mxu0 %v336_v6  ;;  %v337_v15 = vpack.c.bf16 %v325_v13, %v321_v12  ;;  %526 = vmatprep.subr.bf16.mxu1 %v338_v10  ;;  %v340_v19 = vpack.c.bf16 %v332_v16, %v328_v14  ;;  %v342_v20 = vpack.c.bf16 %v334_v18, %v330_v17  ;;  %v327_v21 = vld [vmem:[%s1810_s8 + $0x40] sm:$0xff]  ;;  %v329_v23 = vld [vmem:[%s1810_s8 + $0x50] sm:$0xff]  ;;  %v1937_v8 = vshrl.u32 %v616_v2, 7  ;;  %v1677_v1 = vld [vmem:[%s2175_s5 + $0x48] sm:$0xff]  }
  0x16   : > { %446 = vmatpush1.bf16.msra.mxu0 %v335_v11  ;;  %v331_v22 = vld [vmem:[%s1810_s8 + $0x60] sm:$0xff]  ;;  %v333_v26 = vld [vmem:[%s1810_s8 + $0x70] sm:$0xff]  ;;  %v1678_v2 = vld [vmem:[%s2175_s5 + $0xc8] sm:$0xff]  }
  0x17   : > { %527 = vmatpush1.bf16.msra.mxu1 %v337_v15  ;;  %v339_v25 = vpack.c.bf16 %v331_v22, %v327_v21  ;;  %447 = vmatprep.subr.bf16.mxu0 %v340_v19  ;;  %v341_v29 = vpack.c.bf16 %v333_v26, %v329_v23  ;;  %v618_v15 = vsub.s32 %v615_v7, %v1937_v8  ;;  %v1680_v7 = vld [vmem:[%s2175_s5 + $0x88] sm:$0xff]  }
  0x18   : > { %528 = vmatprep.subr.bf16.mxu1 %v342_v20 }
  0x1a   : > { %448 = vmatpush1.bf16.msra.mxu0 %v339_v25 }
  0x1b   : > { %529 = vmatpush1.bf16.msra.mxu1 %v341_v29  ;;  %v357_v29 = vld [vmem:[%s2172_s2 + $0x28] sm:$0xff] }
  0x1d   : > { %1524 = vmatmul.mubr.msk.bf16.vlgmr.msra.gmra.mrb[0].mxu0 %vm429_vm0, %v1668_v27 }
  0x1e   : > { %1529 = vmatmul.mubr.msk.bf16.vlgmr.msra.gmra.mrb[0].mxu1 %vm429_vm0, %v1668_v27  ;;  %487 = vmatprep.mubr.bf16.mxu0 %v1736_v0 }
  0x1f   : > { %568 = vmatprep.mubr.bf16.mxu1 %v1736_v0 }
  0x25   : > { %1525 = vmatmul.mubr.msk.bf16.gmra.mrb[4].mxu0 %vm429_vm0, %v1669_v30 }
  0x26   : > { %1530 = vmatmul.mubr.msk.bf16.gmra.mrb[4].mxu1 %vm429_vm0, %v1669_v30  ;;  %497 = vmatprep.mubr.bf16.mxu0 %v1736_v0  ;;  %v1264_v30 = vld [vmem:[%s2174_s4 + $0x18] sm:$0xff] }
  0x27   : > { %578 = vmatprep.mubr.bf16.mxu1 %v1736_v0 }
  0x2d   : > { %1526 = vmatmul.mubr.msk.bf16.gmra.mrb[8].mxu0 %vm429_vm0, %v1670_v31 }
  0x2e   : > { %1531 = vmatmul.mubr.msk.bf16.gmra.mrb[8].mxu1 %vm429_vm0, %v1670_v31  ;;  %507 = vmatprep.mubr.bf16.mxu0 %v1736_v0  ;;  %v1673_v31 = vld [vmem:[%s2175_s5 + $0x40] sm:$0xff]  }
  0x2f   : > { %588 = vmatprep.mubr.bf16.mxu1 %v1736_v0  ;;  %1582 = vmatprep.subr.bf16.mxu0 %v1673_v31  ;;  %v1695_v31 = vld [vmem:[%s2175_s5 + $0x28] sm:$0xff]  }
  0x35   : > { %1527 = vmatmul.mubr.msk.bf16.gmra.mrb[12].mxu0 %vm429_vm0, %v1671_v32 }
  0x36   : > { %1532 = vmatmul.mubr.msk.bf16.gmra.mrb[12].mxu1 %vm429_vm0, %v1671_v32  ;;  %517 = vmatprep.mubr.bf16.mxu0 %v1736_v0  ;;  %v1674_v32 = vld [vmem:[%s2175_s5 + $0xc0] sm:$0xff]  }
  0x37   : > { %598 = vmatprep.mubr.bf16.mxu1 %v1736_v0  ;;  %1610 = vmatprep.subr.bf16.mxu1 %v1674_v32  ;;  %v1696_v32 = vld [vmem:[%s2175_s5 + $0xa8] sm:$0xff]  }
  0x38   : > { %1611 = vmatpush3.bf16.msra.mxu1 %v1676_v63  ;;  %v1697_v63 = vld [vmem:[%s2175_s5 + $0x70] sm:$0xff]  }
  0x39   : > { %1612 = vmatprep.subr.bf16.mxu1 %v1678_v2  ;;  %v1699_v2 = vld [vmem:[%s2175_s5 + $0x30] sm:$0xff]  }
  0x3c   : > { %1613 = vmatpush3.bf16.msra.mxu1 %v1680_v7  ;;  %v1261_v7 = vld [vmem:[%s2174_s4] sm:$0xff] }
  0x3d   : > { %1528 = vmatmul.mubr.msk.bf16.gmra.mrb[16].mxu0 %vm429_vm0, %v1672_v33 }
  0x3e   : > { %1533 = vmatmul.mubr.msk.bf16.gmra.mrb[16].mxu1 %vm429_vm0, %v1672_v33  ;;  %v1675_v33 = vld [vmem:[%s2175_s5] sm:$0xff]  }
  0x3f   : > { %1583 = vmatpush3.bf16.msra.mxu0 %v1675_v33  ;;  %v359_v33 = vld [vmem:[%s2172_s2 + $0x38] sm:$0xff] }
  0x40   : > { %1584 = vmatprep.subr.bf16.mxu0 %v1677_v1  ;;  %v1698_v1 = vld [vmem:[%s2175_s5 + $0xf0] sm:$0xff]  }
  0x88   : > { %v404_v6 = vpop.permute.xlu0 %403 }
  0xf0   : > { %v1873_v34 = vpop.f32.mrb[0].mxu0 }
  0xf1   : > { %v1875_v35 = vpop.f32.mrb[0].mxu1  ;;  %v1877_v36 = vpop.f32.mrb[1].mxu0 }
  0xf2   : > { %v1879_v37 = vpop.f32.mrb[1].mxu1  ;;  %v1881_v38 = vpop.f32.mrb[2].mxu0 }
  0xf3   : > { %v1883_v39 = vpop.f32.mrb[2].mxu1  ;;  %v1885_v40 = vpop.f32.mrb[3].mxu0 }
  0xf4   : > { %v1887_v41 = vpop.f32.mrb[3].mxu1 }
  0xf8   : > { %v1889_v42 = vpop.f32.mrb[4].mxu0 }
  0xf9   : > { %v1891_v43 = vpop.f32.mrb[4].mxu1  ;;  %v1893_v44 = vpop.f32.mrb[5].mxu0 }
  0xfa   : > { %v1895_v45 = vpop.f32.mrb[5].mxu1  ;;  %v1897_v46 = vpop.f32.mrb[6].mxu0 }
  0xfb   : > { %v1899_v47 = vpop.f32.mrb[6].mxu1  ;;  %v1901_v48 = vpop.f32.mrb[7].mxu0 }
  0xfc   : > { %v1903_v49 = vpop.f32.mrb[7].mxu1 }
 0x100   : > { %v1905_v50 = vpop.f32.mrb[8].mxu0 }
 0x101   : > { %v1907_v51 = vpop.f32.mrb[8].mxu1  ;;  %v1909_v52 = vpop.f32.mrb[9].mxu0 }
 0x102   : > { %v1911_v53 = vpop.f32.mrb[9].mxu1  ;;  %v1913_v54 = vpop.f32.mrb[10].mxu0 }
 0x103   : > { %v1915_v55 = vpop.f32.mrb[10].mxu1  ;;  %v1917_v56 = vpop.f32.mrb[11].mxu0 }
 0x104   : > { %v1919_v57 = vpop.f32.mrb[11].mxu1 }
 0x108   : > { %v1921_v58 = vpop.f32.mrb[12].mxu0 }
 0x109   : > { %v1923_v59 = vpop.f32.mrb[12].mxu1  ;;  %v1925_v60 = vpop.f32.mrb[13].mxu0 }
 0x10a   : > { %v1927_v61 = vpop.f32.mrb[13].mxu1  ;;  %v1929_v62 = vpop.f32.mrb[14].mxu0 }
 0x10b   : > { %v1931_v3 = vpop.f32.mrb[14].mxu1  ;;  %v1933_v4 = vpop.f32.mrb[15].mxu0 }
 0x10c   : > { %v1935_v5 = vpop.f32.mrb[15].mxu1 }
 0x110   : > { %v519_v9 = vpop.f32.mrb[16].mxu0 }
 0x111   : > { %v520_v10 = vadd.f32 %v519_v9, %v404_v6  ;;  %v600_v11 = vpop.f32.mrb[16].mxu1  ;;  %v521_v12 = vpop.f32.mrb[17].mxu0  ;;  %v1681_v9 = vld [vmem:[%s2175_s5 + $0x50] sm:$0xff]  }
 0x112   : > { %v601_v13 = vadd.f32 %v600_v11, %v404_v6  ;;  %v522_v14 = vadd.f32 %v521_v12, %v404_v6  ;;  %v602_v16 = vpop.f32.mrb[17].mxu1  ;;  %v523_v17 = vpop.f32.mrb[18].mxu0  ;;  %v1683_v11 = vld [vmem:[%s2175_s5 + $0x10] sm:$0xff]  }
 0x113   : > { %v603_v18 = vadd.f32 %v602_v16, %v404_v6  ;;  %v604_v19 = vpop.f32.mrb[18].mxu1  ;;  %v524_v20 = vpop.f32.mrb[19].mxu0  ;;  %v1679_v6 = vld [vmem:[%s2175_s5 + $0x8] sm:$0xff]   ;;  %v1684_v12 = vld [vmem:[%s2175_s5 + $0x90] sm:$0xff]  }
 0x114   : > { %v611_v21 = vcombine.low %v520_v10, %v522_v14  ;;  %v605_v22 = vpop.f32.mrb[19].mxu1  ;;  %v1682_v10 = vld [vmem:[%s2175_s5 + $0xd0] sm:$0xff]   ;;  %1585 = vmatpush3.bf16.msra.mxu0 %v1679_v6  ;;  %v1685_v19 = vld [vmem:[%s2175_s5 + $0x58] sm:$0xff]  }
 0x115   : > { %v612_v23 = vcombine.low %v601_v13, %v603_v18  ;;  %1586 = vmatprep.subr.bf16.mxu0 %v1681_v9  ;;  %1614 = vmatprep.subr.bf16.mxu1 %v1682_v10  ;;  %v355_v18 = vld [vmem:[%s2172_s2 + $0x18] sm:$0xff]  ;;  %v1700_v6 = vld [vmem:[%s2175_s5 + $0xb0] sm:$0xff]  }
 0x116   : > { %v619_v24 = vrot.slane %v611_v21, %v618_v15  ;;  %1615 = vmatpush3.bf16.msra.mxu1 %v1684_v12  ;;  %v1686_v20 = vld [vmem:[%s2175_s5 + $0xd8] sm:$0xff]  }
 0x117   : > { %v626_v25 = vrot.slane %v612_v23, %v618_v15  ;;  %v1687_v21 = vld [vmem:[%s2175_s5 + $0x18] sm:$0xff]   ;;  %v356_v23 = vld [vmem:[%s2172_s2 + $0x20] sm:$0xff]  ;;  %1616 = vmatprep.subr.bf16.mxu1 %v1686_v20 }
 0x118   : > { %1587 = vmatpush3.bf16.msra.mxu0 %v1683_v11  ;;  %v1688_v22 = vld [vmem:[%s2175_s5 + $0x98] sm:$0xff]  }
 0x119   : > { %v627_v26 = vcombine.low %v619_v24, %v626_v25  ;;  %1588 = vmatprep.subr.bf16.mxu0 %v1685_v19  ;;  %v1689_v24 = vld [vmem:[%s2175_s5 + $0x60] sm:$0xff]   ;;  %v1701_v9 = vld [vmem:[%s2175_s5 + $0x78] sm:$0xff]  }
 0x11a   : > { %1617 = vmatpush3.bf16.msra.mxu1 %v1688_v22  ;;  %v1690_v25 = vld [vmem:[%s2175_s5 + $0xe0] sm:$0xff]   ;;  %v1702_v10 = vld [vmem:[%s2175_s5 + $0xf8] sm:$0xff]  }
 0x11b   : > { %v634_v27 = vrot.slane %v627_v26, %v618_v15  ;;  %v1691_v26 = vld [vmem:[%s2175_s5 + $0x20] sm:$0xff]   ;;  %1618 = vmatprep.subr.bf16.mxu1 %v1690_v25  ;;  %v1703_v11 = vld [vmem:[%s2175_s5 + $0x38] sm:$0xff]  }
 0x11c   : > { %1589 = vmatpush3.bf16.msra.mxu0 %v1687_v21  ;;  %v1704_v12 = vld [vmem:[%s2175_s5 + $0xb8] sm:$0xff]  }
 0x11d   : > { %v637_v28 = vsel %vm636_vm1, %v634_v27, -inf  ;;  %1590 = vmatprep.subr.bf16.mxu0 %v1689_v24 }
 0x11e   : > { %638 = vmax.xlane.f32.xlu0 %v637_v28  ;;  %v358_v28 = vld [vmem:[%s2172_s2 + $0x30] sm:$0xff] }
 0x120   : > { %1591 = vmatpush3.bf16.msra.mxu0 %v1691_v26 }
 0x134   : > { %388 = vperm.xlu0 %1666, %v357_v29   ;;  %v1693_v29 = vld [vmem:[%s2175_s5 + $0x68] sm:$0xff]  }
 0x135   : > { %1592 = vmatprep.subr.bf16.mxu0 %v1693_v29 }
 0x136   : > { %1593 = vmatpush3.bf16.msra.mxu0 %v1695_v31 }
 0x137   : > { %1594 = vmatprep.subr.bf16.mxu0 %v1697_v63 }
 0x138   : > { %1282 = vperm.xlu0 %1666, %v1264_v30   ;;  %v1694_v30 = vld [vmem:[%s2175_s5 + $0xe8] sm:$0xff]  }
 0x13a   : > { %1595 = vmatpush3.bf16.msra.mxu0 %v1699_v2 }
 0x13b   : > { %1596 = vmatprep.subr.bf16.mxu0 %v1701_v9 }
 0x13e   : > { %1597 = vmatpush3.bf16.msra.mxu0 %v1703_v11  ;;  %v662_v11 = vsub.s32 2, %v1937_v8 }
 0x1ab   : > { %v639_v13 = vpop.xlane.xlu0 %638 }
 0x1ac   : > { %v640_v14 = vsub.f32 %v634_v27, %v639_v13  ;;  %v1692_v27 = vld [vmem:[%s2175_s5 + $0xa0] sm:$0xff]   ;;  %v1262_v13 = vld [vmem:[%s2174_s4 + $0x8] sm:$0xff] }
 0x1ad   : > { %1619 = vmatpush3.bf16.msra.mxu1 %v1692_v27 }
 0x1ae   : > { %v641_v15 = vmul.f32 1.442695, %v640_v14  ;;  %1620 = vmatprep.subr.bf16.mxu1 %v1694_v30  ;;  %v1263_v14 = vld [vmem:[%s2174_s4 + $0x10] sm:$0xff] }
 0x1b0   : > { %1708 = vpow2.f32 %v641_v15  ;;  %v1072_v15 = vld [vmem:[%s2176_s6] sm:$0xff] }
 0x1b1   : > { %1621 = vmatpush3.bf16.msra.mxu1 %v1696_v32  ;;  %v1074_v20 = vcombine.high %v1072_v15, %v1072_v15  ;;  %v1739_v32 = vmov 1935823168  }
 0x1b2   : > { %1622 = vmatprep.subr.bf16.mxu1 %v1698_v1 }
 0x1b5   : > { %1623 = vmatpush3.bf16.msra.mxu1 %v1700_v6  ;;  %v658_v6 = vsub.s32 0, %v1937_v8 }
 0x1b6   : > { %1624 = vmatprep.subr.bf16.mxu1 %v1702_v10  ;;  %v670_v10 = vsub.s32 6, %v1937_v8 }
 0x1b9   : > { %1625 = vmatpush3.bf16.msra.mxu1 %v1704_v12 }
 0x1ba   : > { %v1983_v16 = vpop.eup %1708 }
 0x1bb   : > { %v643_v17 = vsel %vm636_vm1, %v1983_v16, 0.0 }
 0x1bc   : > { %644 = vadd.xlane.f32.xlu1 %v643_v17  ;;  %v1738_v17 = vmov 1983009808  }
 0x1cd   : > { %378 = vperm.xlu1 %1667, %v355_v18   ;;  %v1076_v18 = vunpack.c.l.s4 %v1738_v17 }
 0x1cf   : > { %v1077_v19 = vunpack.c.0.s8 %v1076_v18 }
 0x1d1   : > { %383 = vperm.xlu1 %1667, %v356_v23   ;;  %v1080_v21 = vsub.s32 %v1077_v19, %v1937_v8 }
 0x1d3   : > { %v1081_v22 = vrot.slane %v1072_v15, %v1080_v21  ;;  %v1088_v23 = vrot.slane %v1074_v20, %v1080_v21 }
 0x1d5   : > { %393 = vperm.xlu1 %1667, %v358_v28   ;;  %v1089_v24 = vcombine.high %v1081_v22, %v1081_v22  ;;  %v1090_v25 = vcombine.high %v1088_v23, %v1088_v23  ;;  %v2072_v26 = vsel %vm1098_vm2, %v1081_v22, 0  ;;  %v2074_v27 = vsel %vm1098_vm2, %v1088_v23, 0  ;;  %v364_v28 = vpop.permute.xlu1 %363 }
 0x1d6   : > { %v480_v12 = vadd.f32 %v1873_v34, %v364_v28  ;;  %v563_v15 = vadd.f32 %v1879_v37, %v364_v28 }
 0x1d7   : > { %1566 = vmatprep.subr.msk.bf16.mxu0 %vm1098_vm2, %v1089_v24  ;;  %1569 = vmatprep.subr.msk.bf16.mxu1 %vm1098_vm2, %v1090_v25 }
 0x1d9   : > { %398 = vperm.xlu1 %1667, %v359_v33   ;;  %v369_v29 = vpop.permute.xlu1 %368  ;;  %v649_v33 = vunpack.c.l.s4 %v1739_v32 }
 0x1da   : > { %v484_v18 = vadd.f32 %v1881_v38, %v369_v29  ;;  %v565_v19 = vadd.f32 %v1883_v39, %v369_v29  ;;  %v486_v20 = vadd.f32 %v1885_v40, %v369_v29 }
 0x1db   : > { %v650_v63 = vunpack.c.0.s8 %v649_v33 }
 0x1dd   : > { %1267 = vperm.xlu1 %1667, %v1261_v7   ;;  %v374_v30 = vpop.permute.xlu1 %373  ;;  %v653_v1 = vsub.s32 %v650_v63, %v1937_v8  ;;  %v666_v7 = vsub.s32 4, %v1937_v8 }
 0x1de   : > { %v492_v37 = vadd.f32 %v1893_v44, %v374_v30  ;;  %v573_v24 = vadd.f32 %v1895_v45, %v374_v30 }
 0x1e1   : > { %1272 = vperm.xlu1 %1667, %v1262_v13   ;;  %v561_v13 = vadd.f32 %v1875_v35, %v364_v28  ;;  %v490_v35 = vadd.f32 %v1889_v42, %v374_v30 }
 0x1e5   : > { %1277 = vperm.xlu1 %1667, %v1263_v14   ;;  %v482_v14 = vadd.f32 %v1877_v36, %v364_v28  ;;  %v571_v36 = vadd.f32 %v1891_v43, %v374_v30 }
 0x249   : > { %v645_v31 = vpop.xlane.xlu1 %644 }
 0x24a   : > { %1710 = vrcp.f32 %v645_v31 }
 0x24d   : > { %v379_v8 = vpop.permute.xlu1 %378 }
 0x24e   : > { %v494_v40 = vadd.f32 %v1897_v46, %v379_v8  ;;  %v577_v31 = vadd.f32 %v1903_v49, %v379_v8 }
 0x254   : > { %v1711_v2 = vpop.eup %1710 }
 0x255   : > { %v647_v9 = vmul.f32 %v1711_v2, %v1983_v16  ;;  %v567_v16 = vadd.f32 %v1887_v41, %v369_v29  ;;  %v496_v41 = vadd.f32 %v1901_v48, %v379_v8  ;;  %v575_v29 = vadd.f32 %v1899_v47, %v379_v8 }
 0x257   : > { %v654_v17 = vrot.slane %v647_v9, %v653_v1 }
 0x259   : > { %v659_v21 = vrot.slane %v654_v17, %v658_v6  ;;  %v667_v22 = vrot.slane %v654_v17, %v666_v7  ;;  %v671_v23 = vrot.slane %v654_v17, %v670_v10  ;;  %v663_v34 = vrot.slane %v654_v17, %v662_v11 }
 0x25b   : > { %v691_v38 = vrot.slane %v671_v23, %v658_v6  ;;  %v683_v25 = vrot.slane %v663_v34, %v658_v6  ;;  %v679_v39 = vrot.slane %v659_v21, %v658_v6  ;;  %v687_v28 = vrot.slane %v667_v22, %v658_v6 }
 0x25d   : > { %v695_v32 = vmul.f32 %v691_v38, %v563_v15  ;;  %v699_v42 = vmul.f32 %v691_v38, %v567_v16  ;;  %v693_v33 = vmul.f32 %v683_v25, %v482_v14  ;;  %v697_v43 = vmul.f32 %v683_v25, %v486_v20 }
 0x25e   : > { %v692_v63 = vmul.f32 %v679_v39, %v480_v12  ;;  %v696_v44 = vmul.f32 %v679_v39, %v484_v18  ;;  %v694_v1 = vmul.f32 %v687_v28, %v561_v13  ;;  %v698_v45 = vmul.f32 %v687_v28, %v565_v19 }
 0x25f   : > { %v711_v30 = vpack.c.bf16 %v699_v42, %v695_v32  ;;  %v709_v2 = vpack.c.bf16 %v697_v43, %v693_v33  ;;  %v701_v7 = vmul.f32 %v683_v25, %v492_v37  ;;  %v705_v6 = vmul.f32 %v683_v25, %v496_v41 }
 0x260   : > { %v708_v9 = vpack.c.bf16 %v696_v44, %v692_v63  ;;  %v710_v46 = vpack.c.bf16 %v698_v45, %v694_v1  ;;  %v703_v10 = vmul.f32 %v691_v38, %v573_v24  ;;  %v707_v48 = vmul.f32 %v691_v38, %v577_v31  ;;  %v384_v45 = vpop.permute.xlu1 %383 }
 0x261   : > { %1053 = vmatprep.mubr.bf16.mxu1 %v711_v30  ;;  %1004 = vmatprep.mubr.bf16.mxu0 %v709_v2  ;;  %v713_v47 = vpack.c.bf16 %v705_v6, %v701_v7  ;;  %v700_v49 = vmul.f32 %v679_v39, %v490_v35  ;;  %v704_v11 = vmul.f32 %v679_v39, %v494_v40  ;;  %v389_v2 = vpop.permute.xlu0 %388 }
 0x262   : > { %1005 = vmatmul.mubr.bf16.vlgmr.msra.gmra.mrb[20].mxu0 %v708_v9  ;;  %1054 = vmatmul.mubr.bf16.vlgmr.msra.gmra.mrb[20].mxu1 %v710_v46  ;;  %v715_v14 = vpack.c.bf16 %v707_v48, %v703_v10  ;;  %v702_v12 = vmul.f32 %v687_v28, %v571_v36  ;;  %v706_v15 = vmul.f32 %v687_v28, %v575_v29 }
 0x263   : > { %1012 = vmatprep.mubr.bf16.mxu0 %v713_v47  ;;  %v712_v13 = vpack.c.bf16 %v704_v11, %v700_v49  ;;  %1112 = vmatpush1.bf16.msra.mxu0 %v2072_v26  ;;  %v500_v7 = vadd.f32 %v1905_v50, %v384_v45  ;;  %v581_v6 = vadd.f32 %v1907_v51, %v384_v45 }
 0x264   : > { %1061 = vmatprep.mubr.bf16.mxu1 %v715_v14  ;;  %v714_v17 = vpack.c.bf16 %v706_v15, %v702_v12  ;;  %1165 = vmatpush1.bf16.msra.mxu1 %v2074_v27  ;;  %v394_v30 = vpop.permute.xlu1 %393  ;;  %v502_v9 = vadd.f32 %v1909_v52, %v384_v45  ;;  %v583_v46 = vadd.f32 %v1911_v53, %v384_v45 }
 0x265   : > { %v504_v10 = vadd.f32 %v1913_v54, %v389_v2  ;;  %v585_v48 = vadd.f32 %v1915_v55, %v389_v2  ;;  %v506_v47 = vadd.f32 %v1917_v56, %v389_v2  ;;  %v587_v49 = vadd.f32 %v1919_v57, %v389_v2 }
 0x266   : > { %v1217_v14 = vmax.f32 %v500_v7, 0.0  ;;  %v1219_v12 = vmax.f32 %v581_v6, 0.0  ;;  %v1218_v50 = vmax.f32 %v502_v9, 0.0 }
 0x267   : > { %v1221_v53 = vmax.f32 %v504_v10, 0.0  ;;  %v1222_v56 = vmax.f32 %v506_v47, 0.0 }
 0x268   : > { %v399_v11 = vpop.permute.xlu1 %398 }
 0x26a   : > { %1013 = vmatmul.mubr.bf16.gmra.mrb[24].mxu0 %v712_v13  ;;  %1062 = vmatmul.mubr.bf16.gmra.mrb[24].mxu1 %v714_v17  ;;  %v1220_v17 = vmax.f32 %v583_v46, 0.0 }
 0x26b   : > { %1143 = vmatprep.mubr.bf16.mxu0 %v1736_v0  ;;  %1196 = vmatprep.mubr.bf16.mxu1 %v1736_v0 }
 0x335   : > { %v1598_v18 = vpop.f32.mrb[20].mxu0  ;;  %v1626_v19 = vpop.f32.mrb[20].mxu1 }
 0x336   : > { %v1599_v20 = vpop.f32.mrb[21].mxu0  ;;  %v1627_v16 = vpop.f32.mrb[21].mxu1 }
 0x337   : > { %v1600_v21 = vadd.f32 %v1599_v20, %v1598_v18  ;;  %v1628_v22 = vadd.f32 %v1627_v16, %v1626_v19  ;;  %v1601_v8 = vpop.f32.mrb[22].mxu0  ;;  %v1629_v23 = vpop.f32.mrb[22].mxu1  ;;  %v1223_v20 = vmax.f32 %v585_v48, 0.0 }
 0x338   : > { %v1602_v34 = vpop.f32.mrb[23].mxu0  ;;  %v1630_v26 = vpop.f32.mrb[23].mxu1 }
 0x339   : > { %v1056_v35 = vadd.f32 %v1628_v22, %v1600_v21  ;;  %v1603_v36 = vadd.f32 %v1602_v34, %v1601_v8  ;;  %v1631_v37 = vadd.f32 %v1630_v26, %v1629_v23  ;;  %v1224_v22 = vmax.f32 %v587_v49, 0.0 }
 0x33a   : > { %v510_v26 = vadd.f32 %v1921_v58, %v394_v30  ;;  %v597_v58 = vadd.f32 %v1935_v5, %v399_v11 }
 0x33b   : > { %v1059_v27 = vadd.f32 %v1631_v37, %v1603_v36 }
 0x33c   : > { %v1232_v2 = vmax.f32 %v597_v58, 0.0 }
 0x33d   : > { %v1070_v24 = vpack.c.bf16 %v1059_v27, %v1056_v35  ;;  %v1604_v38 = vpop.f32.mrb[24].mxu0  ;;  %v1632_v25 = vpop.f32.mrb[24].mxu1  ;;  %v591_v35 = vadd.f32 %v1923_v59, %v394_v30  ;;  %v512_v27 = vadd.f32 %v1925_v60, %v394_v30 }
 0x33e   : > { %v1605_v39 = vpop.f32.mrb[25].mxu0  ;;  %v1633_v28 = vpop.f32.mrb[25].mxu1 }
 0x33f   : > { %v1606_v40 = vadd.f32 %v1605_v39, %v1604_v38  ;;  %v1634_v41 = vadd.f32 %v1633_v28, %v1632_v25  ;;  %v1607_v29 = vpop.f32.mrb[26].mxu0  ;;  %v1635_v31 = vpop.f32.mrb[26].mxu1  ;;  %1567 = vmatmul.mubr.msk.bf16.vlgmr.msra.gmra.mrb[28].mxu0 %vm1091_vm3, %v1070_v24  ;;  %1570 = vmatmul.mubr.msk.bf16.vlgmr.msra.gmra.mrb[28].mxu1 %vm1091_vm3, %v1070_v24  ;;  %v593_v24 = vadd.f32 %v1927_v61, %v394_v30  ;;  %v1227_v59 = vmax.f32 %v591_v35, 0.0 }
 0x340   : > { %v1608_v32 = vpop.f32.mrb[27].mxu0  ;;  %v1636_v42 = vpop.f32.mrb[27].mxu1  ;;  %1153 = vmatprep.mubr.bf16.mxu0 %v1736_v0  ;;  %1206 = vmatprep.mubr.bf16.mxu1 %v1736_v0  ;;  %v514_v39 = vadd.f32 %v1929_v62, %v399_v11  ;;  %v595_v28 = vadd.f32 %v1931_v3, %v399_v11  ;;  %v1226_v60 = vmax.f32 %v512_v27, 0.0 }
 0x341   : > { %v1064_v33 = vadd.f32 %v1634_v41, %v1606_v40  ;;  %v1609_v43 = vadd.f32 %v1608_v32, %v1607_v29  ;;  %v1637_v63 = vadd.f32 %v1636_v42, %v1635_v31  ;;  %v516_v29 = vadd.f32 %v1933_v4, %v399_v11 }
 0x342   : > { %v1225_v31 = vmax.f32 %v510_v26, 0.0  ;;  %v1228_v61 = vmax.f32 %v593_v24, 0.0  ;;  %v1229_v3 = vmax.f32 %v514_v39, 0.0 }
 0x343   : > { %v1067_v44 = vadd.f32 %v1637_v63, %v1609_v43  ;;  %v1230_v30 = vmax.f32 %v516_v29, 0.0 }
 0x345   : > { %v1071_v1 = vpack.c.bf16 %v1067_v44, %v1064_v33  ;;  %v1231_v44 = vmax.f32 %v595_v28, 0.0 }
 0x347   : > { %1568 = vmatmul.mubr.msk.bf16.gmra.mrb[32].mxu0 %vm1091_vm3, %v1071_v1  ;;  %1571 = vmatmul.mubr.msk.bf16.gmra.mrb[32].mxu1 %vm1091_vm3, %v1071_v1 }
 0x348   : > { %1333 = vmatprep.mubr.bf16.mxu0 %v1736_v0  ;;  %1386 = vmatprep.mubr.bf16.mxu1 %v1736_v0 }
 0x412   : > { %v1145_v15 = vpop.f32.mrb[28].mxu0  ;;  %v1198_v13 = vpop.f32.mrb[28].mxu1 }
 0x413   : > { %v1233_v51 = vmul.f32 %v1217_v14, %v1145_v15  ;;  %v1235_v18 = vmul.f32 %v1219_v12, %v1198_v13  ;;  %v1147_v52 = vpop.f32.mrb[29].mxu0  ;;  %v1200_v19 = vpop.f32.mrb[29].mxu1  ;;  %v1706_v12 = vld [vmem:[%s2173_s3] sm:$0xff]   ;;  %v1707_v15 = vld [vmem:[%s2173_s3 + $0x8] sm:$0xff]  }
 0x414   : > { %v1234_v54 = vmul.f32 %v1218_v50, %v1147_v52  ;;  %v1236_v16 = vmul.f32 %v1220_v17, %v1200_v19  ;;  %v1149_v55 = vpop.f32.mrb[30].mxu0  ;;  %v1202_v21 = vpop.f32.mrb[30].mxu1 }
 0x415   : > { %v1237_v57 = vmul.f32 %v1221_v53, %v1149_v55  ;;  %v1239_v8 = vmul.f32 %v1223_v20, %v1202_v21  ;;  %v1151_v23 = vpop.f32.mrb[31].mxu0  ;;  %v1204_v34 = vpop.f32.mrb[31].mxu1 }
 0x416   : > { %v1238_v36 = vmul.f32 %v1222_v56, %v1151_v23  ;;  %v1240_v37 = vmul.f32 %v1224_v22, %v1204_v34  ;;  %v1268_v13 = vpop.permute.xlu1 %1267  ;;  %v1283_v23 = vpop.permute.xlu0 %1282 }
 0x417   : > { %v1253_v38 = vpack.c.bf16 %v1237_v57, %v1233_v51  ;;  %v1255_v25 = vpack.c.bf16 %v1239_v8, %v1235_v18 }
 0x418   : > { %v1254_v40 = vpack.c.bf16 %v1238_v36, %v1234_v54  ;;  %v1256_v41 = vpack.c.bf16 %v1240_v37, %v1236_v16 }
 0x41a   : > { %v1155_v32 = vpop.f32.mrb[32].mxu0  ;;  %v1208_v42 = vpop.f32.mrb[32].mxu1  ;;  %1301 = vmatprep.subr.bf16.mxu0 %v1254_v40  ;;  %1354 = vmatprep.subr.bf16.mxu1 %v1256_v41 }
 0x41b   : > { %v1241_v33 = vmul.f32 %v1225_v31, %v1155_v32  ;;  %v1243_v43 = vmul.f32 %v1227_v59, %v1208_v42  ;;  %v1157_v63 = vpop.f32.mrb[33].mxu0  ;;  %v1210_v62 = vpop.f32.mrb[33].mxu1  ;;  %1302 = vmatpush1.bf16.msra.mxu0 %v1253_v38  ;;  %1355 = vmatpush1.bf16.msra.mxu1 %v1255_v25 }
 0x41c   : > { %v1242_v1 = vmul.f32 %v1226_v60, %v1157_v63  ;;  %v1244_v4 = vmul.f32 %v1228_v61, %v1210_v62  ;;  %v1159_v45 = vpop.f32.mrb[34].mxu0  ;;  %v1212_v5 = vpop.f32.mrb[34].mxu1 }
 0x41d   : > { %v1245_v7 = vmul.f32 %v1229_v3, %v1159_v45  ;;  %v1247_v6 = vmul.f32 %v1231_v44, %v1212_v5  ;;  %v1161_v9 = vpop.f32.mrb[35].mxu0  ;;  %v1214_v46 = vpop.f32.mrb[35].mxu1 }
 0x41e   : > { %v1246_v10 = vmul.f32 %v1230_v30, %v1161_v9  ;;  %v1248_v48 = vmul.f32 %v1232_v2, %v1214_v46  ;;  %v1273_v50 = vpop.permute.xlu1 %1272 }
 0x41f   : > { %v1257_v47 = vpack.c.bf16 %v1245_v7, %v1241_v33  ;;  %v1259_v49 = vpack.c.bf16 %v1247_v6, %v1243_v43 }
 0x420   : > { %v1258_v11 = vpack.c.bf16 %v1246_v10, %v1242_v1  ;;  %v1260_v14 = vpack.c.bf16 %v1248_v48, %v1244_v4 }
 0x422   : > { %1303 = vmatprep.subr.bf16.mxu0 %v1258_v11  ;;  %1356 = vmatprep.subr.bf16.mxu1 %v1260_v14  ;;  %v1278_v34 = vpop.permute.xlu1 %1277 }
 0x423   : > { %1304 = vmatpush1.bf16.msra.mxu0 %v1257_v47  ;;  %1357 = vmatpush1.bf16.msra.mxu1 %v1259_v49 }
 0x426   : > { %1574 = vmatmul.mubr.msk.bf16.vlgmr.msra.gmra.mrb[36].mxu0 %vm429_vm0, %v1706_v12  ;;  %1576 = vmatmul.mubr.msk.bf16.vlgmr.msra.gmra.mrb[36].mxu1 %vm429_vm0, %v1706_v12 }
 0x427   : > { %1343 = vmatprep.mubr.bf16.mxu0 %v1736_v0  ;;  %1396 = vmatprep.mubr.bf16.mxu1 %v1736_v0 }
 0x42e   : > { %1575 = vmatmul.mubr.msk.bf16.gmra.mrb[40].mxu0 %vm429_vm0, %v1707_v15  ;;  %1577 = vmatmul.mubr.msk.bf16.gmra.mrb[40].mxu1 %vm429_vm0, %v1707_v15 }
 0x4f9   : > { %v1335_v17 = vpop.f32.mrb[36].mxu0  ;;  %v1388_v0 = vpop.f32.mrb[36].mxu1 }
 0x4fa   : > { %v1336_v51 = vadd.f32 %v1335_v17, %v1268_v13  ;;  %v1389_v18 = vadd.f32 %v1388_v0, %v1268_v13  ;;  %v1337_v52 = vpop.f32.mrb[37].mxu0  ;;  %v1390_v19 = vpop.f32.mrb[37].mxu1 }
 0x4fb   : > { %v1338_v53 = vadd.f32 %v1337_v52, %v1268_v13  ;;  %v1391_v20 = vadd.f32 %v1390_v19, %v1268_v13  ;;  %v1339_v54 = vpop.f32.mrb[38].mxu0  ;;  %v1392_v16 = vpop.f32.mrb[38].mxu1 }
 0x4fc   : > { %1407 = vst [vmem:[%s2143_s9] sm:$0xff] %v1336_v51  ;;  %1409 = vst [vmem:[%s2143_s9 + $0x10] sm:$0xff] %v1389_v18  ;;  %v1340_v55 = vadd.f32 %v1339_v54, %v1273_v50  ;;  %v1393_v21 = vadd.f32 %v1392_v16, %v1273_v50  ;;  %v1341_v56 = vpop.f32.mrb[39].mxu0  ;;  %v1394_v22 = vpop.f32.mrb[39].mxu1 }
 0x4fd   : > { %1408 = vst [vmem:[%s2143_s9 + $0x8] sm:$0xff] %v1338_v53  ;;  %1410 = vst [vmem:[%s2143_s9 + $0x18] sm:$0xff] %v1391_v20  ;;  %v1342_v57 = vadd.f32 %v1341_v56, %v1273_v50  ;;  %v1395_v8 = vadd.f32 %v1394_v22, %v1273_v50 }
 0x4fe   : > { %1411 = vst [vmem:[%s2143_s9 + $0x20] sm:$0xff] %v1340_v55  ;;  %1413 = vst [vmem:[%s2143_s9 + $0x30] sm:$0xff] %v1393_v21 }
 0x4ff   : > { %1412 = vst [vmem:[%s2143_s9 + $0x28] sm:$0xff] %v1342_v57  ;;  %1414 = vst [vmem:[%s2143_s9 + $0x38] sm:$0xff] %v1395_v8 }
 0x501   : > { %v1345_v26 = vpop.f32.mrb[40].mxu0  ;;  %v1398_v35 = vpop.f32.mrb[40].mxu1 }
 0x502   : > { %v1346_v36 = vadd.f32 %v1345_v26, %v1278_v34  ;;  %v1399_v37 = vadd.f32 %v1398_v35, %v1278_v34  ;;  %v1347_v27 = vpop.f32.mrb[41].mxu0  ;;  %v1400_v24 = vpop.f32.mrb[41].mxu1 }
 0x503   : > { %v1348_v38 = vadd.f32 %v1347_v27, %v1278_v34  ;;  %v1401_v25 = vadd.f32 %v1400_v24, %v1278_v34  ;;  %v1349_v39 = vpop.f32.mrb[42].mxu0  ;;  %v1402_v28 = vpop.f32.mrb[42].mxu1 }
 0x504   : > { %1415 = vst [vmem:[%s2143_s9 + $0x40] sm:$0xff] %v1346_v36  ;;  %1417 = vst [vmem:[%s2143_s9 + $0x50] sm:$0xff] %v1399_v37  ;;  %v1350_v40 = vadd.f32 %v1349_v39, %v1283_v23  ;;  %v1403_v41 = vadd.f32 %v1402_v28, %v1283_v23  ;;  %v1351_v29 = vpop.f32.mrb[43].mxu0  ;;  %v1404_v58 = vpop.f32.mrb[43].mxu1 }
 0x505   : > { %1416 = vst [vmem:[%s2143_s9 + $0x48] sm:$0xff] %v1348_v38  ;;  %1418 = vst [vmem:[%s2143_s9 + $0x58] sm:$0xff] %v1401_v25  ;;  %v1352_v31 = vadd.f32 %v1351_v29, %v1283_v23  ;;  %v1405_v59 = vadd.f32 %v1404_v58, %v1283_v23 }
 0x506   : > { %1419 = vst [vmem:[%s2143_s9 + $0x60] sm:$0xff] %v1350_v40  ;;  %1421 = vst [vmem:[%s2143_s9 + $0x70] sm:$0xff] %v1403_v41 }
 0x507   : > { %1420 = vst [vmem:[%s2143_s9 + $0x68] sm:$0xff] %v1352_v31  ;;  %1422 = vst [vmem:[%s2143_s9 + $0x78] sm:$0xff] %v1405_v59 }
 0x508 PF: > { %s17_s26 = sadd.s32 1, %s1734_s26   ;;  %s2178_s24 = smov %s1730_s25 }
 0x509   : > { %p14_p5 = scmp.ge.s32.totalorder %s17_s26, 4   ;;  %s2179_s25 = smov %s2181_s27 }
 0x50b   :  { %16 = sbr.rel (!%p14_p5) target bundleno = 2 (0x2), region = 78 }

</bundles_post_ra>
